<compile_context>
chip_gen: v7x
topology: tpu7x:2x2x1
jax: 0.10.0
libtpu: 0.0.40
codegen_flags: <defaults>
</compile_context>

<pallas_src>
import functools

import jax
import jax.numpy as jnp
from jax.experimental import pallas as pl
from jax.experimental.pallas import tpu as pltpu

# ---------------- model hyper-parameters (small, deterministic) -------------
EMBED_SIZE = 32
HIDDEN_SIZE = 32
VOCAB_SIZE = 128        # multiple of 128 -> lane-dense vocab head / output
NUM_LAYERS = 2          # kernel below is written for exactly 2 layers
BATCH = 2
BATCH_PAD = 8           # f32 sublane count: all per-step tiles are (8, .)
CAP_LEN = 7             # caption length -> total sequence length = CAP_LEN + 1


# --------------------------- fused decoder kernel ----------------------------
def _decoder_kernel(x_ref, wih0_ref, whh0_ref, b0_ref, wih1_ref, whh1_ref,
                    b1_ref, lw_ref, lb_ref, out_ref, *, T, B, H):
    """Fused LSTM(2 layers) + Linear. All refs are full VMEM blocks.

    x_ref    : (T*B, E)   time-major inputs, row t*B+b = (timestep t, batch b)
    wih0_ref : (E, 4H)    layer-0 input weights     (pre-transposed)
    whh0_ref : (H, 4H)    layer-0 recurrent weights (pre-transposed)
    b0_ref   : (1, 4H)    layer-0 bias (b_ih + b_hh)
    wih1_ref : (H, 4H)    layer-1 input weights     (pre-transposed)
    whh1_ref : (H, 4H)    layer-1 recurrent weights (pre-transposed)
    b1_ref   : (1, 4H)    layer-1 bias (b_ih + b_hh)
    lw_ref   : (H, V)     vocab projection (pre-transposed)
    lb_ref   : (1, V)     vocab bias
    out_ref  : (T*B, V)   logits for every (t, b) position
    """
    # Hoisted, time-invariant layer-0 input projection: one (T*B,E)x(E,4H)
    # MXU matmul instead of T tiny matmuls inside the serial recurrence.
    xg0 = (jnp.dot(x_ref[...], wih0_ref[...],
                   preferred_element_type=jnp.float32) + b0_ref[...])
    whh0 = whh0_ref[...]
    wih1 = wih1_ref[...]
    whh1 = whh1_ref[...]
    b1 = b1_ref[...]

    def act(gates, c):
        # PyTorch gate order: i, f, g, o.
        # 2 full-(B,4H)-vreg transcendentals + lane selects, instead of 5
        # narrow (B,H) transcendentals per call (EUP has a single VLIW slot
        # and this sits on the serial recurrence).
        sg = jax.nn.sigmoid(gates)
        th = jnp.tanh(gates)
        i = sg[:, 0 * H:1 * H]
        f = sg[:, 1 * H:2 * H]
        g = th[:, 2 * H:3 * H]
        o = sg[:, 3 * H:4 * H]
        c_new = f * c + i * g
        return o * jnp.tanh(c_new), c_new

    zeros = jnp.zeros((B, H), jnp.float32)
    h0, c0, h1, c1 = zeros, zeros, zeros, zeros
    h_tops = []

    # T is tiny and static -> fully-unrolled straight-line recurrence.
    for t in range(T):
        # layer 0: recurrent matmul only; input projection already hoisted.
        # B is padded to 8 so this slice is a full-sublane, unmasked tile.
        g0 = xg0[t * B:(t + 1) * B, :] + jnp.dot(
            h0, whh0, preferred_element_type=jnp.float32)
        h0, c0 = act(g0, c0)
        # layer 1: two small matmuls (no per-step lane concat / XLU shuffle).
        g1 = (jnp.dot(h0, wih1, preferred_element_type=jnp.float32)
              + jnp.dot(h1, whh1, preferred_element_type=jnp.float32) + b1)
        h1, c1 = act(g1, c1)
        h_tops.append(h1)

    # Fused vocab head: keep hidden states as values (2 vregs total), one bulk
    # (T*B,H)x(H,V) matmul + one lane-dense (64,128) store. No VMEM scratch,
    # no store->load round-trip behind the last LSTM step.
    h_all = jnp.concatenate(h_tops, axis=0)                    # (T*B, H)
    out_ref[...] = (jnp.dot(h_all, lw_ref[...],
                            preferred_element_type=jnp.float32) + lb_ref[...])


def decoder_core(x2d, wih0_t, whh0_t, b0, wih1_t, whh1_t, b1, lw_t, lb, *, T, B):
    TB, _ = x2d.shape
    H = whh0_t.shape[0]
    V = lw_t.shape[1]

    def full(a):
        return pl.BlockSpec(a.shape, lambda i, nd=a.ndim: (0,) * nd)

    kernel = functools.partial(_decoder_kernel, T=T, B=B, H=H)
    return pl.pallas_call(
        kernel,
        out_shape=jax.ShapeDtypeStruct((TB, V), jnp.float32),
        grid_spec=pltpu.PrefetchScalarGridSpec(
            num_scalar_prefetch=0,
            grid=(1,),                     # single invocation; loop in-kernel
            in_specs=[full(x2d), full(wih0_t), full(whh0_t), full(b0),
                      full(wih1_t), full(whh1_t), full(b1),
                      full(lw_t), full(lb)],
            out_specs=pl.BlockSpec((TB, V), lambda i: (0, 0)),
            scratch_shapes=[],
        ),
        compiler_params=pltpu.CompilerParams(
            dimension_semantics=("arbitrary",)),
    )(x2d, wih0_t, whh0_t, b0, wih1_t, whh1_t, b1, lw_t, lb)


# ------------------------------- Decoder glue --------------------------------
def decoder_forward(params, features, captions, lengths):
    """Replicates Decoder.forward (PackedSequence semantics).

    features: (B, E) float32
    captions: (B, T_cap) int32
    lengths:  static python list of ints, sorted descending (enforce_sorted)
    returns:  (sum(lengths), vocab_size) float32 in PackedSequence order.
    """
    B, E = features.shape
    Bp = BATCH_PAD

    # Embedding lookup + prepend image features (gather glue, not a kernel).
    embeddings = params["embed"][captions]                          # (B, Tc, E)
    seq = jnp.concatenate([features[:, None, :], embeddings], 1)    # (B, T, E)
    T = seq.shape[1]

    # Pad batch to the f32 sublane count so every per-step tile in the kernel
    # is a full (8, lanes) tile; padded rows are dropped in the final gather.
    seq_p = jnp.concatenate(
        [seq, jnp.zeros((Bp - B, T, E), jnp.float32)], axis=0)      # (Bp, T, E)
    x2d = jnp.transpose(seq_p, (1, 0, 2)).reshape(T * Bp, E)        # time-major

    # Weights are already stored in kernel layout (see init_params).
    logits = decoder_core(x2d, params["wih0_t"], params["whh0_t"], params["b0"],
                          params["wih1_t"], params["whh1_t"], params["b1"],
                          params["lin_w_t"], params["lin_b"], T=T, B=Bp)

    # PackedSequence order: for t in 0..T-1, every batch b with length > t.
    # lengths are sorted descending -> valid rows per timestep are a contiguous
    # prefix of the t-th block; use static slices + one concatenate (no gather).
    pieces = []
    for t in range(T):
        n_t = sum(1 for l in lengths if l > t)
        if n_t > 0:
            pieces.append(logits[t * Bp: t * Bp + n_t])
    return jnp.concatenate(pieces, axis=0)


def init_params(key):
    """Parameters stored directly in kernel layout (transposes hoisted here)."""
    ks = jax.random.split(key, 10)
    H, E, V = HIDDEN_SIZE, EMBED_SIZE, VOCAB_SIZE
    s = 0.1
    # PyTorch layouts are (4H, in_features); store the transposed versions.
    wih0 = jax.random.normal(ks[1], (4 * H, E), jnp.float32) * s
    whh0 = jax.random.normal(ks[2], (4 * H, H), jnp.float32) * s
    wih1 = jax.random.normal(ks[5], (4 * H, H), jnp.float32) * s
    whh1 = jax.random.normal(ks[6], (4 * H, H), jnp.float32) * s
    lin_w = jax.random.normal(ks[9], (V, H), jnp.float32) * s
    return {
        "embed": jax.random.normal(ks[0], (V, E), jnp.float32) * s,
        # layer 0: input size E ; layer 1: input size H. Gate order i,f,g,o.
        "wih0_t": wih0.T,                                       # (E, 4H)
        "whh0_t": whh0.T,                                       # (H, 4H)
        "b0": (jax.random.normal(ks[3], (1, 4 * H), jnp.float32) * s
               + jax.random.normal(ks[4], (1, 4 * H), jnp.float32) * s),
        "wih1_t": wih1.T,                                       # (H, 4H)
        "whh1_t": whh1.T,                                       # (H, 4H)
        "b1": (jax.random.normal(ks[7], (1, 4 * H), jnp.float32) * s
               + jax.random.normal(ks[8], (1, 4 * H), jnp.float32) * s),
        "lin_w_t": lin_w.T,                                     # (H, V)
        "lin_b": jnp.zeros((1, V), jnp.float32),
    }


# TODO(synk): Decoder.sample (greedy decode loop) is not implemented; only the
# training-time forward (packed LSTM + linear) is covered.

if __name__ == "__main__":
    key = jax.random.PRNGKey(0)
    kp, kf, kc = jax.random.split(key, 3)
    params = init_params(kp)

    features = jax.random.normal(kf, (BATCH, EMBED_SIZE), jnp.float32)
    captions = jax.random.randint(kc, (BATCH, CAP_LEN), 0, VOCAB_SIZE,
                                  dtype=jnp.int32)
    lengths = [CAP_LEN + 1, CAP_LEN - 1]     # sorted descending, <= T

    out = decoder_forward(params, features, captions, lengths)
    out = jax.block_until_ready(out)
    assert out.shape == (sum(lengths), VOCAB_SIZE), out.shape
    assert bool(jnp.all(jnp.isfinite(out)))
    print("KERNEL_OK")
</pallas_src>

<mosaic_0001>
module attributes {stable_mosaic.version = 11 : i64} {
  func.func @_decoder_kernel(%arg0: i32, %arg1: memref<64x32xf32, #tpu.memory_space<vmem>>, %arg2: memref<32x128xf32, #tpu.memory_space<vmem>>, %arg3: memref<32x128xf32, #tpu.memory_space<vmem>>, %arg4: memref<1x128xf32, #tpu.memory_space<vmem>>, %arg5: memref<32x128xf32, #tpu.memory_space<vmem>>, %arg6: memref<32x128xf32, #tpu.memory_space<vmem>>, %arg7: memref<1x128xf32, #tpu.memory_space<vmem>>, %arg8: memref<32x128xf32, #tpu.memory_space<vmem>>, %arg9: memref<1x128xf32, #tpu.memory_space<vmem>>, %arg10: memref<64x128xf32, #tpu.memory_space<vmem>>) attributes {dimension_semantics = [#tpu.dimension_semantics<arbitrary>], iteration_bounds = array<i64: 1>, scalar_prefetch = 0 : i64, scratch_operands = 0 : i64, tpu.core_type = #tpu.core_type<tc>, window_params = [{pipeline_mode = #tpu.pipeline_mode<synchronous>, transform_indices = @transform_0, window_bounds = array<i64: 64, 32>}, {pipeline_mode = #tpu.pipeline_mode<synchronous>, transform_indices = @transform_1, window_bounds = array<i64: 32, 128>}, {pipeline_mode = #tpu.pipeline_mode<synchronous>, transform_indices = @transform_2, window_bounds = array<i64: 32, 128>}, {pipeline_mode = #tpu.pipeline_mode<synchronous>, transform_indices = @transform_3, window_bounds = array<i64: 1, 128>}, {pipeline_mode = #tpu.pipeline_mode<synchronous>, transform_indices = @transform_4, window_bounds = array<i64: 32, 128>}, {pipeline_mode = #tpu.pipeline_mode<synchronous>, transform_indices = @transform_5, window_bounds = array<i64: 32, 128>}, {pipeline_mode = #tpu.pipeline_mode<synchronous>, transform_indices = @transform_6, window_bounds = array<i64: 1, 128>}, {pipeline_mode = #tpu.pipeline_mode<synchronous>, transform_indices = @transform_7, window_bounds = array<i64: 32, 128>}, {pipeline_mode = #tpu.pipeline_mode<synchronous>, transform_indices = @transform_8, window_bounds = array<i64: 1, 128>}, {pipeline_mode = #tpu.pipeline_mode<synchronous>, transform_indices = @transform_9, window_bounds = array<i64: 64, 128>}]} {
    %c0 = arith.constant 0 : index
    %c0_0 = arith.constant 0 : index
    %0 = vector.load %arg1[%c0, %c0_0] : memref<64x32xf32, #tpu.memory_space<vmem>>, vector<64x32xf32>
    %c0_1 = arith.constant 0 : index
    %c0_2 = arith.constant 0 : index
    %1 = vector.load %arg2[%c0_1, %c0_2] : memref<32x128xf32, #tpu.memory_space<vmem>>, vector<32x128xf32>
    %cst = arith.constant dense<0.000000e+00> : vector<64x128xf32>
    %2 = tpu.matmul %0, %1, %cst {dimension_numbers = #tpu.dot_dimension_numbers<[1], [0], [0], [1], [0, 0, 1, 1], [], []>} : vector<64x32xf32>, vector<32x128xf32>, vector<64x128xf32> -> vector<64x128xf32>
    %c0_3 = arith.constant 0 : index
    %c0_4 = arith.constant 0 : index
    %3 = vector.load %arg4[%c0_3, %c0_4] : memref<1x128xf32, #tpu.memory_space<vmem>>, vector<1x128xf32>
    %4 = vector.broadcast %3 : vector<1x128xf32> to vector<64x128xf32>
    %5 = arith.addf %2, %4 : vector<64x128xf32>
    %c0_5 = arith.constant 0 : index
    %c0_6 = arith.constant 0 : index
    %6 = vector.load %arg3[%c0_5, %c0_6] : memref<32x128xf32, #tpu.memory_space<vmem>>, vector<32x128xf32>
    %c0_7 = arith.constant 0 : index
    %c0_8 = arith.constant 0 : index
    %7 = vector.load %arg5[%c0_7, %c0_8] : memref<32x128xf32, #tpu.memory_space<vmem>>, vector<32x128xf32>
    %c0_9 = arith.constant 0 : index
    %c0_10 = arith.constant 0 : index
    %8 = vector.load %arg6[%c0_9, %c0_10] : memref<32x128xf32, #tpu.memory_space<vmem>>, vector<32x128xf32>
    %c0_11 = arith.constant 0 : index
    %c0_12 = arith.constant 0 : index
    %9 = vector.load %arg7[%c0_11, %c0_12] : memref<1x128xf32, #tpu.memory_space<vmem>>, vector<1x128xf32>
    %cst_13 = arith.constant 0.000000e+00 : f32
    %10 = vector.broadcast %cst_13 : f32 to vector<8x32xf32>
    %11 = vector.extract_strided_slice %5 {offsets = [0, 0], sizes = [8, 128], strides = [1, 1]} : vector<64x128xf32> to vector<8x128xf32>
    %cst_14 = arith.constant dense<0.000000e+00> : vector<8x128xf32>
    %12 = tpu.matmul %10, %6, %cst_14 {dimension_numbers = #tpu.dot_dimension_numbers<[1], [0], [0], [1], [0, 0, 1, 1], [], []>} : vector<8x32xf32>, vector<32x128xf32>, vector<8x128xf32> -> vector<8x128xf32>
    %13 = arith.addf %11, %12 : vector<8x128xf32>
    %14 = arith.negf %13 : vector<8x128xf32>
    %15 = math.exp %14 : vector<8x128xf32>
    %cst_15 = arith.constant 1.000000e+00 : f32
    %16 = vector.broadcast %cst_15 : f32 to vector<8x128xf32>
    %17 = arith.addf %16, %15 : vector<8x128xf32>
    %18 = arith.divf %16, %17 : vector<8x128xf32>
    %19 = math.tanh %13 : vector<8x128xf32>
    %20 = vector.extract_strided_slice %18 {offsets = [0, 0], sizes = [8, 32], strides = [1, 1]} : vector<8x128xf32> to vector<8x32xf32>
    %21 = vector.extract_strided_slice %18 {offsets = [0, 32], sizes = [8, 32], strides = [1, 1]} : vector<8x128xf32> to vector<8x32xf32>
    %22 = vector.extract_strided_slice %19 {offsets = [0, 64], sizes = [8, 32], strides = [1, 1]} : vector<8x128xf32> to vector<8x32xf32>
    %23 = vector.extract_strided_slice %18 {offsets = [0, 96], sizes = [8, 32], strides = [1, 1]} : vector<8x128xf32> to vector<8x32xf32>
    %24 = arith.mulf %21, %10 : vector<8x32xf32>
    %25 = arith.mulf %20, %22 : vector<8x32xf32>
    %26 = arith.addf %24, %25 : vector<8x32xf32>
    %27 = math.tanh %26 : vector<8x32xf32>
    %28 = arith.mulf %23, %27 : vector<8x32xf32>
    %cst_16 = arith.constant dense<0.000000e+00> : vector<8x128xf32>
    %29 = tpu.matmul %28, %7, %cst_16 {dimension_numbers = #tpu.dot_dimension_numbers<[1], [0], [0], [1], [0, 0, 1, 1], [], []>} : vector<8x32xf32>, vector<32x128xf32>, vector<8x128xf32> -> vector<8x128xf32>
    %cst_17 = arith.constant dense<0.000000e+00> : vector<8x128xf32>
    %30 = tpu.matmul %10, %8, %cst_17 {dimension_numbers = #tpu.dot_dimension_numbers<[1], [0], [0], [1], [0, 0, 1, 1], [], []>} : vector<8x32xf32>, vector<32x128xf32>, vector<8x128xf32> -> vector<8x128xf32>
    %31 = arith.addf %29, %30 : vector<8x128xf32>
    %32 = vector.broadcast %9 : vector<1x128xf32> to vector<8x128xf32>
    %33 = arith.addf %31, %32 : vector<8x128xf32>
    %34 = arith.negf %33 : vector<8x128xf32>
    %35 = math.exp %34 : vector<8x128xf32>
    %cst_18 = arith.constant 1.000000e+00 : f32
    %36 = vector.broadcast %cst_18 : f32 to vector<8x128xf32>
    %37 = arith.addf %36, %35 : vector<8x128xf32>
    %38 = arith.divf %36, %37 : vector<8x128xf32>
    %39 = math.tanh %33 : vector<8x128xf32>
    %40 = vector.extract_strided_slice %38 {offsets = [0, 0], sizes = [8, 32], strides = [1, 1]} : vector<8x128xf32> to vector<8x32xf32>
    %41 = vector.extract_strided_slice %38 {offsets = [0, 32], sizes = [8, 32], strides = [1, 1]} : vector<8x128xf32> to vector<8x32xf32>
    %42 = vector.extract_strided_slice %39 {offsets = [0, 64], sizes = [8, 32], strides = [1, 1]} : vector<8x128xf32> to vector<8x32xf32>
    %43 = vector.extract_strided_slice %38 {offsets = [0, 96], sizes = [8, 32], strides = [1, 1]} : vector<8x128xf32> to vector<8x32xf32>
    %44 = arith.mulf %41, %10 : vector<8x32xf32>
    %45 = arith.mulf %40, %42 : vector<8x32xf32>
    %46 = arith.addf %44, %45 : vector<8x32xf32>
    %47 = math.tanh %46 : vector<8x32xf32>
    %48 = arith.mulf %43, %47 : vector<8x32xf32>
    %49 = vector.extract_strided_slice %5 {offsets = [8, 0], sizes = [8, 128], strides = [1, 1]} : vector<64x128xf32> to vector<8x128xf32>
    %cst_19 = arith.constant dense<0.000000e+00> : vector<8x128xf32>
    %50 = tpu.matmul %28, %6, %cst_19 {dimension_numbers = #tpu.dot_dimension_numbers<[1], [0], [0], [1], [0, 0, 1, 1], [], []>} : vector<8x32xf32>, vector<32x128xf32>, vector<8x128xf32> -> vector<8x128xf32>
    %51 = arith.addf %49, %50 : vector<8x128xf32>
    %52 = arith.negf %51 : vector<8x128xf32>
    %53 = math.exp %52 : vector<8x128xf32>
    %cst_20 = arith.constant 1.000000e+00 : f32
    %54 = vector.broadcast %cst_20 : f32 to vector<8x128xf32>
    %55 = arith.addf %54, %53 : vector<8x128xf32>
    %56 = arith.divf %54, %55 : vector<8x128xf32>
    %57 = math.tanh %51 : vector<8x128xf32>
    %58 = vector.extract_strided_slice %56 {offsets = [0, 0], sizes = [8, 32], strides = [1, 1]} : vector<8x128xf32> to vector<8x32xf32>
    %59 = vector.extract_strided_slice %56 {offsets = [0, 32], sizes = [8, 32], strides = [1, 1]} : vector<8x128xf32> to vector<8x32xf32>
    %60 = vector.extract_strided_slice %57 {offsets = [0, 64], sizes = [8, 32], strides = [1, 1]} : vector<8x128xf32> to vector<8x32xf32>
    %61 = vector.extract_strided_slice %56 {offsets = [0, 96], sizes = [8, 32], strides = [1, 1]} : vector<8x128xf32> to vector<8x32xf32>
    %62 = arith.mulf %59, %26 : vector<8x32xf32>
    %63 = arith.mulf %58, %60 : vector<8x32xf32>
    %64 = arith.addf %62, %63 : vector<8x32xf32>
    %65 = math.tanh %64 : vector<8x32xf32>
    %66 = arith.mulf %61, %65 : vector<8x32xf32>
    %cst_21 = arith.constant dense<0.000000e+00> : vector<8x128xf32>
    %67 = tpu.matmul %66, %7, %cst_21 {dimension_numbers = #tpu.dot_dimension_numbers<[1], [0], [0], [1], [0, 0, 1, 1], [], []>} : vector<8x32xf32>, vector<32x128xf32>, vector<8x128xf32> -> vector<8x128xf32>
    %cst_22 = arith.constant dense<0.000000e+00> : vector<8x128xf32>
    %68 = tpu.matmul %48, %8, %cst_22 {dimension_numbers = #tpu.dot_dimension_numbers<[1], [0], [0], [1], [0, 0, 1, 1], [], []>} : vector<8x32xf32>, vector<32x128xf32>, vector<8x128xf32> -> vector<8x128xf32>
    %69 = arith.addf %67, %68 : vector<8x128xf32>
    %70 = vector.broadcast %9 : vector<1x128xf32> to vector<8x128xf32>
    %71 = arith.addf %69, %70 : vector<8x128xf32>
    %72 = arith.negf %71 : vector<8x128xf32>
    %73 = math.exp %72 : vector<8x128xf32>
    %cst_23 = arith.constant 1.000000e+00 : f32
    %74 = vector.broadcast %cst_23 : f32 to vector<8x128xf32>
    %75 = arith.addf %74, %73 : vector<8x128xf32>
    %76 = arith.divf %74, %75 : vector<8x128xf32>
    %77 = math.tanh %71 : vector<8x128xf32>
    %78 = vector.extract_strided_slice %76 {offsets = [0, 0], sizes = [8, 32], strides = [1, 1]} : vector<8x128xf32> to vector<8x32xf32>
    %79 = vector.extract_strided_slice %76 {offsets = [0, 32], sizes = [8, 32], strides = [1, 1]} : vector<8x128xf32> to vector<8x32xf32>
    %80 = vector.extract_strided_slice %77 {offsets = [0, 64], sizes = [8, 32], strides = [1, 1]} : vector<8x128xf32> to vector<8x32xf32>
    %81 = vector.extract_strided_slice %76 {offsets = [0, 96], sizes = [8, 32], strides = [1, 1]} : vector<8x128xf32> to vector<8x32xf32>
    %82 = arith.mulf %79, %46 : vector<8x32xf32>
    %83 = arith.mulf %78, %80 : vector<8x32xf32>
    %84 = arith.addf %82, %83 : vector<8x32xf32>
    %85 = math.tanh %84 : vector<8x32xf32>
    %86 = arith.mulf %81, %85 : vector<8x32xf32>
    %87 = vector.extract_strided_slice %5 {offsets = [16, 0], sizes = [8, 128], strides = [1, 1]} : vector<64x128xf32> to vector<8x128xf32>
    %cst_24 = arith.constant dense<0.000000e+00> : vector<8x128xf32>
    %88 = tpu.matmul %66, %6, %cst_24 {dimension_numbers = #tpu.dot_dimension_numbers<[1], [0], [0], [1], [0, 0, 1, 1], [], []>} : vector<8x32xf32>, vector<32x128xf32>, vector<8x128xf32> -> vector<8x128xf32>
    %89 = arith.addf %87, %88 : vector<8x128xf32>
    %90 = arith.negf %89 : vector<8x128xf32>
    %91 = math.exp %90 : vector<8x128xf32>
    %cst_25 = arith.constant 1.000000e+00 : f32
    %92 = vector.broadcast %cst_25 : f32 to vector<8x128xf32>
    %93 = arith.addf %92, %91 : vector<8x128xf32>
    %94 = arith.divf %92, %93 : vector<8x128xf32>
    %95 = math.tanh %89 : vector<8x128xf32>
    %96 = vector.extract_strided_slice %94 {offsets = [0, 0], sizes = [8, 32], strides = [1, 1]} : vector<8x128xf32> to vector<8x32xf32>
    %97 = vector.extract_strided_slice %94 {offsets = [0, 32], sizes = [8, 32], strides = [1, 1]} : vector<8x128xf32> to vector<8x32xf32>
    %98 = vector.extract_strided_slice %95 {offsets = [0, 64], sizes = [8, 32], strides = [1, 1]} : vector<8x128xf32> to vector<8x32xf32>
    %99 = vector.extract_strided_slice %94 {offsets = [0, 96], sizes = [8, 32], strides = [1, 1]} : vector<8x128xf32> to vector<8x32xf32>
    %100 = arith.mulf %97, %64 : vector<8x32xf32>
    %101 = arith.mulf %96, %98 : vector<8x32xf32>
    %102 = arith.addf %100, %101 : vector<8x32xf32>
    %103 = math.tanh %102 : vector<8x32xf32>
    %104 = arith.mulf %99, %103 : vector<8x32xf32>
    %cst_26 = arith.constant dense<0.000000e+00> : vector<8x128xf32>
    %105 = tpu.matmul %104, %7, %cst_26 {dimension_numbers = #tpu.dot_dimension_numbers<[1], [0], [0], [1], [0, 0, 1, 1], [], []>} : vector<8x32xf32>, vector<32x128xf32>, vector<8x128xf32> -> vector<8x128xf32>
    %cst_27 = arith.constant dense<0.000000e+00> : vector<8x128xf32>
    %106 = tpu.matmul %86, %8, %cst_27 {dimension_numbers = #tpu.dot_dimension_numbers<[1], [0], [0], [1], [0, 0, 1, 1], [], []>} : vector<8x32xf32>, vector<32x128xf32>, vector<8x128xf32> -> vector<8x128xf32>
    %107 = arith.addf %105, %106 : vector<8x128xf32>
    %108 = vector.broadcast %9 : vector<1x128xf32> to vector<8x128xf32>
    %109 = arith.addf %107, %108 : vector<8x128xf32>
    %110 = arith.negf %109 : vector<8x128xf32>
    %111 = math.exp %110 : vector<8x128xf32>
    %cst_28 = arith.constant 1.000000e+00 : f32
    %112 = vector.broadcast %cst_28 : f32 to vector<8x128xf32>
    %113 = arith.addf %112, %111 : vector<8x128xf32>
    %114 = arith.divf %112, %113 : vector<8x128xf32>
    %115 = math.tanh %109 : vector<8x128xf32>
    %116 = vector.extract_strided_slice %114 {offsets = [0, 0], sizes = [8, 32], strides = [1, 1]} : vector<8x128xf32> to vector<8x32xf32>
    %117 = vector.extract_strided_slice %114 {offsets = [0, 32], sizes = [8, 32], strides = [1, 1]} : vector<8x128xf32> to vector<8x32xf32>
    %118 = vector.extract_strided_slice %115 {offsets = [0, 64], sizes = [8, 32], strides = [1, 1]} : vector<8x128xf32> to vector<8x32xf32>
    %119 = vector.extract_strided_slice %114 {offsets = [0, 96], sizes = [8, 32], strides = [1, 1]} : vector<8x128xf32> to vector<8x32xf32>
    %120 = arith.mulf %117, %84 : vector<8x32xf32>
    %121 = arith.mulf %116, %118 : vector<8x32xf32>
    %122 = arith.addf %120, %121 : vector<8x32xf32>
    %123 = math.tanh %122 : vector<8x32xf32>
    %124 = arith.mulf %119, %123 : vector<8x32xf32>
    %125 = vector.extract_strided_slice %5 {offsets = [24, 0], sizes = [8, 128], strides = [1, 1]} : vector<64x128xf32> to vector<8x128xf32>
    %cst_29 = arith.constant dense<0.000000e+00> : vector<8x128xf32>
    %126 = tpu.matmul %104, %6, %cst_29 {dimension_numbers = #tpu.dot_dimension_numbers<[1], [0], [0], [1], [0, 0, 1, 1], [], []>} : vector<8x32xf32>, vector<32x128xf32>, vector<8x128xf32> -> vector<8x128xf32>
    %127 = arith.addf %125, %126 : vector<8x128xf32>
    %128 = arith.negf %127 : vector<8x128xf32>
    %129 = math.exp %128 : vector<8x128xf32>
    %cst_30 = arith.constant 1.000000e+00 : f32
    %130 = vector.broadcast %cst_30 : f32 to vector<8x128xf32>
    %131 = arith.addf %130, %129 : vector<8x128xf32>
    %132 = arith.divf %130, %131 : vector<8x128xf32>
    %133 = math.tanh %127 : vector<8x128xf32>
    %134 = vector.extract_strided_slice %132 {offsets = [0, 0], sizes = [8, 32], strides = [1, 1]} : vector<8x128xf32> to vector<8x32xf32>
    %135 = vector.extract_strided_slice %132 {offsets = [0, 32], sizes = [8, 32], strides = [1, 1]} : vector<8x128xf32> to vector<8x32xf32>
    %136 = vector.extract_strided_slice %133 {offsets = [0, 64], sizes = [8, 32], strides = [1, 1]} : vector<8x128xf32> to vector<8x32xf32>
    %137 = vector.extract_strided_slice %132 {offsets = [0, 96], sizes = [8, 32], strides = [1, 1]} : vector<8x128xf32> to vector<8x32xf32>
    %138 = arith.mulf %135, %102 : vector<8x32xf32>
    %139 = arith.mulf %134, %136 : vector<8x32xf32>
    %140 = arith.addf %138, %139 : vector<8x32xf32>
    %141 = math.tanh %140 : vector<8x32xf32>
    %142 = arith.mulf %137, %141 : vector<8x32xf32>
    %cst_31 = arith.constant dense<0.000000e+00> : vector<8x128xf32>
    %143 = tpu.matmul %142, %7, %cst_31 {dimension_numbers = #tpu.dot_dimension_numbers<[1], [0], [0], [1], [0, 0, 1, 1], [], []>} : vector<8x32xf32>, vector<32x128xf32>, vector<8x128xf32> -> vector<8x128xf32>
    %cst_32 = arith.constant dense<0.000000e+00> : vector<8x128xf32>
    %144 = tpu.matmul %124, %8, %cst_32 {dimension_numbers = #tpu.dot_dimension_numbers<[1], [0], [0], [1], [0, 0, 1, 1], [], []>} : vector<8x32xf32>, vector<32x128xf32>, vector<8x128xf32> -> vector<8x128xf32>
    %145 = arith.addf %143, %144 : vector<8x128xf32>
    %146 = vector.broadcast %9 : vector<1x128xf32> to vector<8x128xf32>
    %147 = arith.addf %145, %146 : vector<8x128xf32>
    %148 = arith.negf %147 : vector<8x128xf32>
    %149 = math.exp %148 : vector<8x128xf32>
    %cst_33 = arith.constant 1.000000e+00 : f32
    %150 = vector.broadcast %cst_33 : f32 to vector<8x128xf32>
    %151 = arith.addf %150, %149 : vector<8x128xf32>
    %152 = arith.divf %150, %151 : vector<8x128xf32>
    %153 = math.tanh %147 : vector<8x128xf32>
    %154 = vector.extract_strided_slice %152 {offsets = [0, 0], sizes = [8, 32], strides = [1, 1]} : vector<8x128xf32> to vector<8x32xf32>
    %155 = vector.extract_strided_slice %152 {offsets = [0, 32], sizes = [8, 32], strides = [1, 1]} : vector<8x128xf32> to vector<8x32xf32>
    %156 = vector.extract_strided_slice %153 {offsets = [0, 64], sizes = [8, 32], strides = [1, 1]} : vector<8x128xf32> to vector<8x32xf32>
    %157 = vector.extract_strided_slice %152 {offsets = [0, 96], sizes = [8, 32], strides = [1, 1]} : vector<8x128xf32> to vector<8x32xf32>
    %158 = arith.mulf %155, %122 : vector<8x32xf32>
    %159 = arith.mulf %154, %156 : vector<8x32xf32>
    %160 = arith.addf %158, %159 : vector<8x32xf32>
    %161 = math.tanh %160 : vector<8x32xf32>
    %162 = arith.mulf %157, %161 : vector<8x32xf32>
    %163 = vector.extract_strided_slice %5 {offsets = [32, 0], sizes = [8, 128], strides = [1, 1]} : vector<64x128xf32> to vector<8x128xf32>
    %cst_34 = arith.constant dense<0.000000e+00> : vector<8x128xf32>
    %164 = tpu.matmul %142, %6, %cst_34 {dimension_numbers = #tpu.dot_dimension_numbers<[1], [0], [0], [1], [0, 0, 1, 1], [], []>} : vector<8x32xf32>, vector<32x128xf32>, vector<8x128xf32> -> vector<8x128xf32>
    %165 = arith.addf %163, %164 : vector<8x128xf32>
    %166 = arith.negf %165 : vector<8x128xf32>
    %167 = math.exp %166 : vector<8x128xf32>
    %cst_35 = arith.constant 1.000000e+00 : f32
    %168 = vector.broadcast %cst_35 : f32 to vector<8x128xf32>
    %169 = arith.addf %168, %167 : vector<8x128xf32>
    %170 = arith.divf %168, %169 : vector<8x128xf32>
    %171 = math.tanh %165 : vector<8x128xf32>
    %172 = vector.extract_strided_slice %170 {offsets = [0, 0], sizes = [8, 32], strides = [1, 1]} : vector<8x128xf32> to vector<8x32xf32>
    %173 = vector.extract_strided_slice %170 {offsets = [0, 32], sizes = [8, 32], strides = [1, 1]} : vector<8x128xf32> to vector<8x32xf32>
    %174 = vector.extract_strided_slice %171 {offsets = [0, 64], sizes = [8, 32], strides = [1, 1]} : vector<8x128xf32> to vector<8x32xf32>
    %175 = vector.extract_strided_slice %170 {offsets = [0, 96], sizes = [8, 32], strides = [1, 1]} : vector<8x128xf32> to vector<8x32xf32>
    %176 = arith.mulf %173, %140 : vector<8x32xf32>
    %177 = arith.mulf %172, %174 : vector<8x32xf32>
    %178 = arith.addf %176, %177 : vector<8x32xf32>
    %179 = math.tanh %178 : vector<8x32xf32>
    %180 = arith.mulf %175, %179 : vector<8x32xf32>
    %cst_36 = arith.constant dense<0.000000e+00> : vector<8x128xf32>
    %181 = tpu.matmul %180, %7, %cst_36 {dimension_numbers = #tpu.dot_dimension_numbers<[1], [0], [0], [1], [0, 0, 1, 1], [], []>} : vector<8x32xf32>, vector<32x128xf32>, vector<8x128xf32> -> vector<8x128xf32>
    %cst_37 = arith.constant dense<0.000000e+00> : vector<8x128xf32>
    %182 = tpu.matmul %162, %8, %cst_37 {dimension_numbers = #tpu.dot_dimension_numbers<[1], [0], [0], [1], [0, 0, 1, 1], [], []>} : vector<8x32xf32>, vector<32x128xf32>, vector<8x128xf32> -> vector<8x128xf32>
    %183 = arith.addf %181, %182 : vector<8x128xf32>
    %184 = vector.broadcast %9 : vector<1x128xf32> to vector<8x128xf32>
    %185 = arith.addf %183, %184 : vector<8x128xf32>
    %186 = arith.negf %185 : vector<8x128xf32>
    %187 = math.exp %186 : vector<8x128xf32>
    %cst_38 = arith.constant 1.000000e+00 : f32
    %188 = vector.broadcast %cst_38 : f32 to vector<8x128xf32>
    %189 = arith.addf %188, %187 : vector<8x128xf32>
    %190 = arith.divf %188, %189 : vector<8x128xf32>
    %191 = math.tanh %185 : vector<8x128xf32>
    %192 = vector.extract_strided_slice %190 {offsets = [0, 0], sizes = [8, 32], strides = [1, 1]} : vector<8x128xf32> to vector<8x32xf32>
    %193 = vector.extract_strided_slice %190 {offsets = [0, 32], sizes = [8, 32], strides = [1, 1]} : vector<8x128xf32> to vector<8x32xf32>
    %194 = vector.extract_strided_slice %191 {offsets = [0, 64], sizes = [8, 32], strides = [1, 1]} : vector<8x128xf32> to vector<8x32xf32>
    %195 = vector.extract_strided_slice %190 {offsets = [0, 96], sizes = [8, 32], strides = [1, 1]} : vector<8x128xf32> to vector<8x32xf32>
    %196 = arith.mulf %193, %160 : vector<8x32xf32>
    %197 = arith.mulf %192, %194 : vector<8x32xf32>
    %198 = arith.addf %196, %197 : vector<8x32xf32>
    %199 = math.tanh %198 : vector<8x32xf32>
    %200 = arith.mulf %195, %199 : vector<8x32xf32>
    %201 = vector.extract_strided_slice %5 {offsets = [40, 0], sizes = [8, 128], strides = [1, 1]} : vector<64x128xf32> to vector<8x128xf32>
    %cst_39 = arith.constant dense<0.000000e+00> : vector<8x128xf32>
    %202 = tpu.matmul %180, %6, %cst_39 {dimension_numbers = #tpu.dot_dimension_numbers<[1], [0], [0], [1], [0, 0, 1, 1], [], []>} : vector<8x32xf32>, vector<32x128xf32>, vector<8x128xf32> -> vector<8x128xf32>
    %203 = arith.addf %201, %202 : vector<8x128xf32>
    %204 = arith.negf %203 : vector<8x128xf32>
    %205 = math.exp %204 : vector<8x128xf32>
    %cst_40 = arith.constant 1.000000e+00 : f32
    %206 = vector.broadcast %cst_40 : f32 to vector<8x128xf32>
    %207 = arith.addf %206, %205 : vector<8x128xf32>
    %208 = arith.divf %206, %207 : vector<8x128xf32>
    %209 = math.tanh %203 : vector<8x128xf32>
    %210 = vector.extract_strided_slice %208 {offsets = [0, 0], sizes = [8, 32], strides = [1, 1]} : vector<8x128xf32> to vector<8x32xf32>
    %211 = vector.extract_strided_slice %208 {offsets = [0, 32], sizes = [8, 32], strides = [1, 1]} : vector<8x128xf32> to vector<8x32xf32>
    %212 = vector.extract_strided_slice %209 {offsets = [0, 64], sizes = [8, 32], strides = [1, 1]} : vector<8x128xf32> to vector<8x32xf32>
    %213 = vector.extract_strided_slice %208 {offsets = [0, 96], sizes = [8, 32], strides = [1, 1]} : vector<8x128xf32> to vector<8x32xf32>
    %214 = arith.mulf %211, %178 : vector<8x32xf32>
    %215 = arith.mulf %210, %212 : vector<8x32xf32>
    %216 = arith.addf %214, %215 : vector<8x32xf32>
    %217 = math.tanh %216 : vector<8x32xf32>
    %218 = arith.mulf %213, %217 : vector<8x32xf32>
    %cst_41 = arith.constant dense<0.000000e+00> : vector<8x128xf32>
    %219 = tpu.matmul %218, %7, %cst_41 {dimension_numbers = #tpu.dot_dimension_numbers<[1], [0], [0], [1], [0, 0, 1, 1], [], []>} : vector<8x32xf32>, vector<32x128xf32>, vector<8x128xf32> -> vector<8x128xf32>
    %cst_42 = arith.constant dense<0.000000e+00> : vector<8x128xf32>
    %220 = tpu.matmul %200, %8, %cst_42 {dimension_numbers = #tpu.dot_dimension_numbers<[1], [0], [0], [1], [0, 0, 1, 1], [], []>} : vector<8x32xf32>, vector<32x128xf32>, vector<8x128xf32> -> vector<8x128xf32>
    %221 = arith.addf %219, %220 : vector<8x128xf32>
    %222 = vector.broadcast %9 : vector<1x128xf32> to vector<8x128xf32>
    %223 = arith.addf %221, %222 : vector<8x128xf32>
    %224 = arith.negf %223 : vector<8x128xf32>
    %225 = math.exp %224 : vector<8x128xf32>
    %cst_43 = arith.constant 1.000000e+00 : f32
    %226 = vector.broadcast %cst_43 : f32 to vector<8x128xf32>
    %227 = arith.addf %226, %225 : vector<8x128xf32>
    %228 = arith.divf %226, %227 : vector<8x128xf32>
    %229 = math.tanh %223 : vector<8x128xf32>
    %230 = vector.extract_strided_slice %228 {offsets = [0, 0], sizes = [8, 32], strides = [1, 1]} : vector<8x128xf32> to vector<8x32xf32>
    %231 = vector.extract_strided_slice %228 {offsets = [0, 32], sizes = [8, 32], strides = [1, 1]} : vector<8x128xf32> to vector<8x32xf32>
    %232 = vector.extract_strided_slice %229 {offsets = [0, 64], sizes = [8, 32], strides = [1, 1]} : vector<8x128xf32> to vector<8x32xf32>
    %233 = vector.extract_strided_slice %228 {offsets = [0, 96], sizes = [8, 32], strides = [1, 1]} : vector<8x128xf32> to vector<8x32xf32>
    %234 = arith.mulf %231, %198 : vector<8x32xf32>
    %235 = arith.mulf %230, %232 : vector<8x32xf32>
    %236 = arith.addf %234, %235 : vector<8x32xf32>
    %237 = math.tanh %236 : vector<8x32xf32>
    %238 = arith.mulf %233, %237 : vector<8x32xf32>
    %239 = vector.extract_strided_slice %5 {offsets = [48, 0], sizes = [8, 128], strides = [1, 1]} : vector<64x128xf32> to vector<8x128xf32>
    %cst_44 = arith.constant dense<0.000000e+00> : vector<8x128xf32>
    %240 = tpu.matmul %218, %6, %cst_44 {dimension_numbers = #tpu.dot_dimension_numbers<[1], [0], [0], [1], [0, 0, 1, 1], [], []>} : vector<8x32xf32>, vector<32x128xf32>, vector<8x128xf32> -> vector<8x128xf32>
    %241 = arith.addf %239, %240 : vector<8x128xf32>
    %242 = arith.negf %241 : vector<8x128xf32>
    %243 = math.exp %242 : vector<8x128xf32>
    %cst_45 = arith.constant 1.000000e+00 : f32
    %244 = vector.broadcast %cst_45 : f32 to vector<8x128xf32>
    %245 = arith.addf %244, %243 : vector<8x128xf32>
    %246 = arith.divf %244, %245 : vector<8x128xf32>
    %247 = math.tanh %241 : vector<8x128xf32>
    %248 = vector.extract_strided_slice %246 {offsets = [0, 0], sizes = [8, 32], strides = [1, 1]} : vector<8x128xf32> to vector<8x32xf32>
    %249 = vector.extract_strided_slice %246 {offsets = [0, 32], sizes = [8, 32], strides = [1, 1]} : vector<8x128xf32> to vector<8x32xf32>
    %250 = vector.extract_strided_slice %247 {offsets = [0, 64], sizes = [8, 32], strides = [1, 1]} : vector<8x128xf32> to vector<8x32xf32>
    %251 = vector.extract_strided_slice %246 {offsets = [0, 96], sizes = [8, 32], strides = [1, 1]} : vector<8x128xf32> to vector<8x32xf32>
    %252 = arith.mulf %249, %216 : vector<8x32xf32>
    %253 = arith.mulf %248, %250 : vector<8x32xf32>
    %254 = arith.addf %252, %253 : vector<8x32xf32>
    %255 = math.tanh %254 : vector<8x32xf32>
    %256 = arith.mulf %251, %255 : vector<8x32xf32>
    %cst_46 = arith.constant dense<0.000000e+00> : vector<8x128xf32>
    %257 = tpu.matmul %256, %7, %cst_46 {dimension_numbers = #tpu.dot_dimension_numbers<[1], [0], [0], [1], [0, 0, 1, 1], [], []>} : vector<8x32xf32>, vector<32x128xf32>, vector<8x128xf32> -> vector<8x128xf32>
    %cst_47 = arith.constant dense<0.000000e+00> : vector<8x128xf32>
    %258 = tpu.matmul %238, %8, %cst_47 {dimension_numbers = #tpu.dot_dimension_numbers<[1], [0], [0], [1], [0, 0, 1, 1], [], []>} : vector<8x32xf32>, vector<32x128xf32>, vector<8x128xf32> -> vector<8x128xf32>
    %259 = arith.addf %257, %258 : vector<8x128xf32>
    %260 = vector.broadcast %9 : vector<1x128xf32> to vector<8x128xf32>
    %261 = arith.addf %259, %260 : vector<8x128xf32>
    %262 = arith.negf %261 : vector<8x128xf32>
    %263 = math.exp %262 : vector<8x128xf32>
    %cst_48 = arith.constant 1.000000e+00 : f32
    %264 = vector.broadcast %cst_48 : f32 to vector<8x128xf32>
    %265 = arith.addf %264, %263 : vector<8x128xf32>
    %266 = arith.divf %264, %265 : vector<8x128xf32>
    %267 = math.tanh %261 : vector<8x128xf32>
    %268 = vector.extract_strided_slice %266 {offsets = [0, 0], sizes = [8, 32], strides = [1, 1]} : vector<8x128xf32> to vector<8x32xf32>
    %269 = vector.extract_strided_slice %266 {offsets = [0, 32], sizes = [8, 32], strides = [1, 1]} : vector<8x128xf32> to vector<8x32xf32>
    %270 = vector.extract_strided_slice %267 {offsets = [0, 64], sizes = [8, 32], strides = [1, 1]} : vector<8x128xf32> to vector<8x32xf32>
    %271 = vector.extract_strided_slice %266 {offsets = [0, 96], sizes = [8, 32], strides = [1, 1]} : vector<8x128xf32> to vector<8x32xf32>
    %272 = arith.mulf %269, %236 : vector<8x32xf32>
    %273 = arith.mulf %268, %270 : vector<8x32xf32>
    %274 = arith.addf %272, %273 : vector<8x32xf32>
    %275 = math.tanh %274 : vector<8x32xf32>
    %276 = arith.mulf %271, %275 : vector<8x32xf32>
    %277 = vector.extract_strided_slice %5 {offsets = [56, 0], sizes = [8, 128], strides = [1, 1]} : vector<64x128xf32> to vector<8x128xf32>
    %cst_49 = arith.constant dense<0.000000e+00> : vector<8x128xf32>
    %278 = tpu.matmul %256, %6, %cst_49 {dimension_numbers = #tpu.dot_dimension_numbers<[1], [0], [0], [1], [0, 0, 1, 1], [], []>} : vector<8x32xf32>, vector<32x128xf32>, vector<8x128xf32> -> vector<8x128xf32>
    %279 = arith.addf %277, %278 : vector<8x128xf32>
    %280 = arith.negf %279 : vector<8x128xf32>
    %281 = math.exp %280 : vector<8x128xf32>
    %cst_50 = arith.constant 1.000000e+00 : f32
    %282 = vector.broadcast %cst_50 : f32 to vector<8x128xf32>
    %283 = arith.addf %282, %281 : vector<8x128xf32>
    %284 = arith.divf %282, %283 : vector<8x128xf32>
    %285 = math.tanh %279 : vector<8x128xf32>
    %286 = vector.extract_strided_slice %284 {offsets = [0, 0], sizes = [8, 32], strides = [1, 1]} : vector<8x128xf32> to vector<8x32xf32>
    %287 = vector.extract_strided_slice %284 {offsets = [0, 32], sizes = [8, 32], strides = [1, 1]} : vector<8x128xf32> to vector<8x32xf32>
    %288 = vector.extract_strided_slice %285 {offsets = [0, 64], sizes = [8, 32], strides = [1, 1]} : vector<8x128xf32> to vector<8x32xf32>
    %289 = vector.extract_strided_slice %284 {offsets = [0, 96], sizes = [8, 32], strides = [1, 1]} : vector<8x128xf32> to vector<8x32xf32>
    %290 = arith.mulf %287, %254 : vector<8x32xf32>
    %291 = arith.mulf %286, %288 : vector<8x32xf32>
    %292 = arith.addf %290, %291 : vector<8x32xf32>
    %293 = math.tanh %292 : vector<8x32xf32>
    %294 = arith.mulf %289, %293 : vector<8x32xf32>
    %cst_51 = arith.constant dense<0.000000e+00> : vector<8x128xf32>
    %295 = tpu.matmul %294, %7, %cst_51 {dimension_numbers = #tpu.dot_dimension_numbers<[1], [0], [0], [1], [0, 0, 1, 1], [], []>} : vector<8x32xf32>, vector<32x128xf32>, vector<8x128xf32> -> vector<8x128xf32>
    %cst_52 = arith.constant dense<0.000000e+00> : vector<8x128xf32>
    %296 = tpu.matmul %276, %8, %cst_52 {dimension_numbers = #tpu.dot_dimension_numbers<[1], [0], [0], [1], [0, 0, 1, 1], [], []>} : vector<8x32xf32>, vector<32x128xf32>, vector<8x128xf32> -> vector<8x128xf32>
    %297 = arith.addf %295, %296 : vector<8x128xf32>
    %298 = vector.broadcast %9 : vector<1x128xf32> to vector<8x128xf32>
    %299 = arith.addf %297, %298 : vector<8x128xf32>
    %300 = arith.negf %299 : vector<8x128xf32>
    %301 = math.exp %300 : vector<8x128xf32>
    %cst_53 = arith.constant 1.000000e+00 : f32
    %302 = vector.broadcast %cst_53 : f32 to vector<8x128xf32>
    %303 = arith.addf %302, %301 : vector<8x128xf32>
    %304 = arith.divf %302, %303 : vector<8x128xf32>
    %305 = math.tanh %299 : vector<8x128xf32>
    %306 = vector.extract_strided_slice %304 {offsets = [0, 0], sizes = [8, 32], strides = [1, 1]} : vector<8x128xf32> to vector<8x32xf32>
    %307 = vector.extract_strided_slice %304 {offsets = [0, 32], sizes = [8, 32], strides = [1, 1]} : vector<8x128xf32> to vector<8x32xf32>
    %308 = vector.extract_strided_slice %305 {offsets = [0, 64], sizes = [8, 32], strides = [1, 1]} : vector<8x128xf32> to vector<8x32xf32>
    %309 = vector.extract_strided_slice %304 {offsets = [0, 96], sizes = [8, 32], strides = [1, 1]} : vector<8x128xf32> to vector<8x32xf32>
    %310 = arith.mulf %307, %274 : vector<8x32xf32>
    %311 = arith.mulf %306, %308 : vector<8x32xf32>
    %312 = arith.addf %310, %311 : vector<8x32xf32>
    %313 = math.tanh %312 : vector<8x32xf32>
    %314 = arith.mulf %309, %313 : vector<8x32xf32>
    %315 = tpu.concatenate %48, %86, %124, %162, %200, %238, %276, %314 in 0 : vector<8x32xf32>, vector<8x32xf32>, vector<8x32xf32>, vector<8x32xf32>, vector<8x32xf32>, vector<8x32xf32>, vector<8x32xf32>, vector<8x32xf32> -> vector<64x32xf32>
    %c0_54 = arith.constant 0 : index
    %c0_55 = arith.constant 0 : index
    %316 = vector.load %arg8[%c0_54, %c0_55] : memref<32x128xf32, #tpu.memory_space<vmem>>, vector<32x128xf32>
    %cst_56 = arith.constant dense<0.000000e+00> : vector<64x128xf32>
    %317 = tpu.matmul %315, %316, %cst_56 {dimension_numbers = #tpu.dot_dimension_numbers<[1], [0], [0], [1], [0, 0, 1, 1], [], []>} : vector<64x32xf32>, vector<32x128xf32>, vector<64x128xf32> -> vector<64x128xf32>
    %c0_57 = arith.constant 0 : index
    %c0_58 = arith.constant 0 : index
    %318 = vector.load %arg9[%c0_57, %c0_58] : memref<1x128xf32, #tpu.memory_space<vmem>>, vector<1x128xf32>
    %319 = vector.broadcast %318 : vector<1x128xf32> to vector<64x128xf32>
    %320 = arith.addf %317, %319 : vector<64x128xf32>
    %c0_59 = arith.constant 0 : index
    %c0_60 = arith.constant 0 : index
    %321 = vector.load %arg10[%c0_59, %c0_60] : memref<64x128xf32, #tpu.memory_space<vmem>>, vector<64x128xf32>
    tpu.vector_store %arg10[%c0_59, %c0_60], %320 {strides = array<i32>} : memref<64x128xf32, #tpu.memory_space<vmem>>, vector<64x128xf32>,
    return
  }
  func.func @transform_0(%arg0: i32) -> (i32, i32) {
    %c0_i32 = arith.constant 0 : i32
    %c0_i32_0 = arith.constant 0 : i32
    %c0_i32_1 = arith.constant 0 : i32
    return %c0_i32, %c0_i32_0 : i32, i32
  }
  func.func @transform_1(%arg0: i32) -> (i32, i32) {
    %c0_i32 = arith.constant 0 : i32
    %c0_i32_0 = arith.constant 0 : i32
    %c0_i32_1 = arith.constant 0 : i32
    return %c0_i32, %c0_i32_0 : i32, i32
  }
  func.func @transform_2(%arg0: i32) -> (i32, i32) {
    %c0_i32 = arith.constant 0 : i32
    %c0_i32_0 = arith.constant 0 : i32
    %c0_i32_1 = arith.constant 0 : i32
    return %c0_i32, %c0_i32_0 : i32, i32
  }
  func.func @transform_3(%arg0: i32) -> (i32, i32) {
    %c0_i32 = arith.constant 0 : i32
    %c0_i32_0 = arith.constant 0 : i32
    %c0_i32_1 = arith.constant 0 : i32
    return %c0_i32, %c0_i32_0 : i32, i32
  }
  func.func @transform_4(%arg0: i32) -> (i32, i32) {
    %c0_i32 = arith.constant 0 : i32
    %c0_i32_0 = arith.constant 0 : i32
    %c0_i32_1 = arith.constant 0 : i32
    return %c0_i32, %c0_i32_0 : i32, i32
  }
  func.func @transform_5(%arg0: i32) -> (i32, i32) {
    %c0_i32 = arith.constant 0 : i32
    %c0_i32_0 = arith.constant 0 : i32
    %c0_i32_1 = arith.constant 0 : i32
    return %c0_i32, %c0_i32_0 : i32, i32
  }
  func.func @transform_6(%arg0: i32) -> (i32, i32) {
    %c0_i32 = arith.constant 0 : i32
    %c0_i32_0 = arith.constant 0 : i32
    %c0_i32_1 = arith.constant 0 : i32
    return %c0_i32, %c0_i32_0 : i32, i32
  }
  func.func @transform_7(%arg0: i32) -> (i32, i32) {
    %c0_i32 = arith.constant 0 : i32
    %c0_i32_0 = arith.constant 0 : i32
    %c0_i32_1 = arith.constant 0 : i32
    return %c0_i32, %c0_i32_0 : i32, i32
  }
  func.func @transform_8(%arg0: i32) -> (i32, i32) {
    %c0_i32 = arith.constant 0 : i32
    %c0_i32_0 = arith.constant 0 : i32
    %c0_i32_1 = arith.constant 0 : i32
    return %c0_i32, %c0_i32_0 : i32, i32
  }
  func.func @transform_9(%arg0: i32) -> (i32, i32) {
    %c0_i32 = arith.constant 0 : i32
    %c0_i32_0 = arith.constant 0 : i32
    %c0_i32_1 = arith.constant 0 : i32
    return %c0_i32, %c0_i32_0 : i32, i32
  }
}

</mosaic_0001>

<bundles_post_ra>
// kernel: tpu_custom_call.1
= control target key start
LH: loop header
LB: loop body
LE: loop exit
PB: predicated region body
PF: predicated region fallthrough
CT: control target
= control target key end

     0   :  { %14 = vsyncpa [#allocation3], 0  ;;  %s3971_s0 = inlined_call_operand.vmem [shape: f32[64,32], index: 0, kind: input, shape index: {}]   ;;  %s3972_s1 = inlined_call_operand.vmem [shape: f32[32,128], index: 1, kind: input, shape index: {}]   ;;  %s3973_s2 = inlined_call_operand.vmem [shape: f32[32,128], index: 2, kind: input, shape index: {}]   ;;  %s3974_s3 = inlined_call_operand.vmem [shape: f32[1,128], index: 3, kind: input, shape index: {}]   ;;  %s3975_s4 = inlined_call_operand.vmem [shape: f32[32,128], index: 4, kind: input, shape index: {}]   ;;  %s3976_s5 = inlined_call_operand.hbm [shape: f32[32,128], index: 5, kind: input, shape index: {}]   ;;  %s3977_s6 = inlined_call_operand.vmem [shape: f32[1,128], index: 6, kind: input, shape index: {}]   ;;  %s3978_s7 = inlined_call_operand.hbm [shape: f32[32,128], index: 7, kind: input, shape index: {}]   ;;  %s3979_s8 = inlined_call_operand.vmem [shape: f32[1,128], index: 8, kind: input, shape index: {}]   ;;  %s3980_s9 = inlined_call_operand.hbm [shape: f32[64,128], index: 9, kind: output, shape index: {}]  }
   0x1   :  { %15 = vsyncpa [#allocation6], 0 }
   0x2   :  { %16 = vsyncpa [#allocation4], 0  ;;  %s3414_s30 = smov [#allocation2]   ;;  %s3342_s13 = scalar_lea.hbm %s3976_s5, 512 }
   0x3   :  { %s32_s10 = sshll.u32 %s3414_s30, 4  ;;  %p3343_p0 = scmp.ne.s32.totalorder %s3976_s5, %s3342_s13  ;;  %s33_s10 = int_to_ptr.vmem [resolvable:$true] %s32_s10 }
   0x4   :  { %p3346_p1 = scmp.lt.u32.totalorder %s3342_s13, %s3976_s5 }
   0x6   :  { %p3348_p2 = pnand %p3346_p1, %p3343_p0 }
   0x8   :  { %3351 = shalt.err (!%p3348_p2)
}
   0x9   :  { %s3352_s18 = scalar_lea.vmem %s33_s10, 512  ;;  %p3357_p4 = scmp.lt.s32.totalorder %s33_s10, %s33_s10 }
   0xa   :  { %p3353_p3 = scmp.ne.s32.totalorder %s33_s10, %s3352_s18  ;;  %p3358_p5 = scmp.lt.s32.totalorder %s3352_s18, %s3352_s18 }
   0xc   :  { %p3359_p6 = por %p3358_p5, %p3357_p4 }
   0xe   :  { %p3360_p7 = pnand %p3359_p6, %p3353_p3 }
  0x10   :  { %3363 = shalt.err (!%p3360_p7)
}
  0x11   :  { %s3415_s19 = smov 128   ;;  %s3416_s20 = smov 8  }
  0x12   :  { %38 = dma.hbm_to_vmem [thread:$0]  %s3976_s5, 512, %s33_s10, [#allocation3], %s3415_s19, %s3415_s19, %s3416_s20  }
  0x13   :  { %s3417_s23 = smov [#allocation5]   ;;  %s3364_s27 = scalar_lea.hbm %s3978_s7, 512 }
  0x14   :  { %s46_s24 = sshll.u32 %s3417_s23, 4  ;;  %p3365_p8 = scmp.ne.s32.totalorder %s3978_s7, %s3364_s27  ;;  %s47_s24 = int_to_ptr.vmem [resolvable:$true] %s46_s24 }
  0x15   :  { %p3368_p9 = scmp.lt.u32.totalorder %s3364_s27, %s3978_s7 }
  0x17   :  { %p3370_p10 = pnand %p3368_p9, %p3365_p8 }
  0x19   :  { %3373 = shalt.err (!%p3370_p10)
}
  0x1a   :  { %s3374_s12 = scalar_lea.vmem %s47_s24, 512  ;;  %p3379_p12 = scmp.lt.s32.totalorder %s47_s24, %s47_s24 }
  0x1b   :  { %p3375_p11 = scmp.ne.s32.totalorder %s47_s24, %s3374_s12  ;;  %p3380_p13 = scmp.lt.s32.totalorder %s3374_s12, %s3374_s12 }
  0x1d   :  { %p3381_p0 = por %p3380_p13, %p3379_p12 }
  0x1f   :  { %p3382_p1 = pnand %p3381_p0, %p3375_p11 }
  0x21   :  { %3385 = shalt.err (!%p3382_p1)
}
  0x22   :  { %52 = dma.hbm_to_vmem [thread:$0]  %s3978_s7, 512, %s47_s24, [#allocation6], %s3415_s19, %s3415_s19, %s3416_s20  }
  0x23   :  { %3408 = dma.done.wait [#allocation3], 512  }
  0x24   :  { %3409 = vsyncadd [#allocation3], 4294966784 }
  0x25   :  { %3410 = dma.done.wait [#allocation6], 512  }
  0x26   :  { %3411 = vsyncadd [#allocation6], 4294966784  ;;  %vm80_vm0 = vcmask 261120   ;;  %v69_v0 = vld [vmem:[%s3972_s1] sm:$0xff]  ;;  %v70_v1 = vld [vmem:[%s3972_s1 + $0x8] sm:$0xff]  ;;  %v3418_v13 = vmov 0.0|0.0  }
  0x27   :  { %v71_v2 = vld [vmem:[%s3972_s1 + $0x10] sm:$0xff]  ;;  %v3039_v3 = vpack.c.bf16 %v70_v1, %v69_v0  ;;  %v72_v4 = vld [vmem:[%s3972_s1 + $0x18] sm:$0xff]  ;;  %v65_v5 = vld [vmem:[%s3971_s0 + $0x20] sm:$0xff]  ;;  %vm3419_vm1 = vmmov 0   ;;  %v3420_v19 = vmov 0.0   ;;  %s3421_s7 = smov 64  }
  0x28   :  { %v3043_v6 = vpack.c.bf16 %v72_v4, %v71_v2  ;;  %2749 = vmatprep.mubr.msk.f32.mxu1 %vm80_vm0, %v65_v5  ;;  %v61_v7 = vld [vmem:[%s3971_s0] sm:$0xff]  ;;  %v211_v9 = vld [vmem:[%s3973_s2 + $0x8] sm:$0xff]  ;;  %v67_v14 = vld [vmem:[%s3971_s0 + $0x30] sm:$0xff]  ;;  %s3422_s22 = smov 32  }
  0x29   :  { %3199 = vmatprep.subr.bf16.mxu1 %v3039_v3  ;;  %3040 = vmatprep.subr.bf16.mxu0 %v3039_v3  ;;  %v210_v8 = vld [vmem:[%s3973_s2] sm:$0xff]  ;;  %v66_v10 = vld [vmem:[%s3971_s0 + $0x28] sm:$0xff]  ;;  %v212_v15 = vld [vmem:[%s3973_s2 + $0x10] sm:$0xff] }
  0x2a   :  { %3201 = vmatpush3.bf16.msra.mxu1 %v3039_v3  ;;  %3042 = vmatpush3.bf16.msra.mxu0 %v3039_v3  ;;  %v3533_v11 = vpack.c.bf16 %v211_v9, %v210_v8  ;;  %v62_v12 = vld [vmem:[%s3971_s0 + $0x8] sm:$0xff]  ;;  %v213_v16 = vld [vmem:[%s3973_s2 + $0x18] sm:$0xff]  ;;  %v3576_v24 = vld [vmem:[%s3974_s3] ss:$0 sm:$0xff] }
  0x2b   :  { %3200 = vmatprep.subr.bf16.mxu1 %v3043_v6  ;;  %3044 = vmatprep.subr.bf16.mxu0 %v3043_v6  ;;  %v68_v17 = vld [vmem:[%s3971_s0 + $0x38] sm:$0xff]  ;;  %v3556_v18 = vpack.c.bf16 %v213_v16, %v212_v15  ;;  %v218_v41 = vld [vmem:[#allocation2] sm:$0xff]  ;;  %v219_v42 = vld [vmem:[#allocation2 + $0x8] sm:$0xff] }
  0x2c   :  { %2743 = vmatprep.mubr.msk.f32.mxu0 %vm80_vm0, %v61_v7  ;;  %v220_v43 = vld [vmem:[#allocation2 + $0x10] sm:$0xff]  ;;  %v3588_v44 = vpack.c.bf16 %v219_v42, %v218_v41  ;;  %v221_v45 = vld [vmem:[#allocation2 + $0x18] sm:$0xff]  ;;  %v214_v46 = vld [vmem:[%s3975_s4] sm:$0xff] }
  0x2d   :  { %v215_v47 = vld [vmem:[%s3975_s4 + $0x8] sm:$0xff]  ;;  %v63_v49 = vld [vmem:[%s3971_s0 + $0x10] sm:$0xff]  ;;  %v64_v50 = vld [vmem:[%s3971_s0 + $0x18] sm:$0xff]  ;;  %v3608_v52 = vpack.c.bf16 %v221_v45, %v220_v43 }
  0x2e   :  { %3202 = vmatpush3.bf16.msra.mxu1 %v3043_v6  ;;  %3046 = vmatpush3.bf16.msra.mxu0 %v3043_v6  ;;  %v3596_v48 = vpack.c.bf16 %v215_v47, %v214_v46  ;;  %v216_v51 = vld [vmem:[%s3975_s4 + $0x10] sm:$0xff]  ;;  %v217_v53 = vld [vmem:[%s3975_s4 + $0x18] sm:$0xff]  ;;  %v3658_v0 = vld [vmem:[%s3977_s6] ss:$0 sm:$0xff] }
  0x2f   :  { %3047 = vmatprep.subr.bf16.mxu1 %v3418_v13  ;;  %3059 = vmatprep.subr.bf16.mxu0 %v3418_v13  ;;  %v3616_v54 = vpack.c.bf16 %v217_v53, %v216_v51 }
  0x31   :  { %2750 = vmatmul.mubr.msk.f32.vlgmr.msra.gmra.mrb[0].mxu1 %vm80_vm0, %v66_v10  ;;  %2744 = vmatmul.mubr.msk.f32.vlgmr.msra.gmra.mrb[0].mxu0 %vm80_vm0, %v62_v12 }
  0x32   :  { %3049 = vmatpush3.bf16.msra.mxu1 %v3533_v11  ;;  %2752 = vmatprep.mubr.msk.f32.mxu1 %vm80_vm0, %v67_v14 }
  0x33   :  { %3050 = vmatprep.subr.bf16.mxu1 %v3418_v13  ;;  %2746 = vmatprep.mubr.msk.f32.mxu0 %vm80_vm0, %v63_v49 }
  0x34   :  { %3061 = vmatpush3.bf16.msra.mxu0 %v3596_v48 }
  0x35   :  { %2753 = vmatmul.mubr.msk.f32.gmra.mrb[2].mxu1 %vm80_vm0, %v68_v17  ;;  %2747 = vmatmul.mubr.msk.f32.gmra.mrb[2].mxu0 %vm80_vm0, %v64_v50 }
  0x36   :  { %3052 = vmatpush3.bf16.msra.mxu1 %v3556_v18  ;;  %2763 = vmatprep.mubr.msk.f32.mxu1 %vm3419_vm1, %v3420_v19 }
  0x37   :  { %3053 = vmatprep.subr.bf16.mxu1 %v3418_v13  ;;  %3062 = vmatprep.subr.bf16.mxu0 %v3418_v13 }
  0x38   :  { %2785 = vmatprep.mubr.msk.f32.mxu0 %vm3419_vm1, %v3420_v19  ;;  %3064 = vmatpush3.bf16.msra.mxu0 %v3616_v54 }
  0x39   :  { %2764 = vmatmul.mubr.f32.vlgmr.msra.gmra.mrb[4].mxu1 %v3420_v19  ;;  %3071 = vmatprep.subr.bf16.mxu0 %v3418_v13 }
  0x3a   :  { %2774 = vmatprep.mubr.msk.f32.mxu1 %vm3419_vm1, %v3420_v19  ;;  %3055 = vmatpush3.bf16.msra.mxu1 %v3588_v44 }
  0x3b   :  { %3056 = vmatprep.subr.bf16.mxu1 %v3418_v13 }
  0x3e   :  { %3058 = vmatpush3.bf16.msra.mxu1 %v3608_v52 }
  0x3f   :  { %3065 = vmatprep.subr.bf16.mxu1 %v3418_v13 }
  0x41   :  { %2775 = vmatmul.mubr.f32.vlgmr.msra.gmra.mrb[6].mxu1 %v3420_v19 }
  0x42   :  { %3067 = vmatpush3.bf16.msra.mxu1 %v3533_v11  ;;  %2796 = vmatprep.mubr.msk.f32.mxu1 %vm3419_vm1, %v3420_v19 }
  0x43   :  { %3068 = vmatprep.subr.bf16.mxu1 %v3418_v13 }
  0x46   :  { %3070 = vmatpush3.bf16.msra.mxu1 %v3556_v18 }
  0x47   :  { %3077 = vmatprep.subr.bf16.mxu1 %v3418_v13 }
 0x104   :  { %v3567_v20 = vpop.f32.mrb[0].mxu1  ;;  %v3569_v21 = vpop.f32.mrb[0].mxu0 }
 0x105   :  { %v3571_v22 = vpop.f32.mrb[1].mxu1  ;;  %v171_v23 = vpop.f32.mrb[1].mxu0  ;;  %v177_v63 = vadd.f32 %v3569_v21, %v3576_v24 }
 0x106   :  { %v172_v27 = vadd.f32 %v3576_v24, %v171_v23 }
 0x108   :  { %v3578_v25 = vpop.f32.mrb[2].mxu1  ;;  %v3635_v58 = vpop.f32.mrb[2].mxu0 }
 0x109   :  { %v3580_v26 = vpop.f32.mrb[3].mxu1  ;;  %v3637_v59 = vpop.f32.mrb[3].mxu0 }
 0x10c   :  { %v292_v28 = vpop.f32.mrb[4].mxu1 }
 0x10d   :  { %v296_v29 = vadd.f32 %v292_v28, %v172_v27  ;;  %v2765_v30 = vpop.f32.mrb[5].mxu1 }
 0x10f   :  { %3213 = vtanh.f32 %v296_v29  ;;  %v2543_v32 = vmul.f32 -1.442695, %v296_v29 }
 0x111   :  { %3215 = vpow2.f32 %v2543_v32 }
 0x114   :  { %v387_v60 = vpop.f32.mrb[6].mxu1 }
 0x115   :  { %v2776_v61 = vpop.f32.mrb[7].mxu1 }
 0x119   :  { %v3214_v31 = vpop.eup %3213 }
 0x11a   :  { %306 = vrot.lane.b32.xlu0 %v3214_v31, %s3421_s7 }
 0x11b   :  { %v3216_v33 = vpop.eup %3215 }
 0x11c   :  { %v300_v34 = vadd.f32 1.0, %v3216_v33 }
 0x11e   :  { %3217 = vrcp.f32 %v300_v34 }
 0x128   :  { %v3218_v35 = vpop.eup %3217 }
 0x129   :  { %v304_v38 = vmul.f32 0.0, %v3218_v35 }
 0x18c   :  { %v307_v36 = vpop.permute.xlu0 %306 }
 0x18d   :  { %v309_v37 = vmul.f32 %v3218_v35, %v307_v36 }
 0x18f   :  { %311 = vrot.lane.b32.xlu0 %v309_v37, %s3422_s22 }
 0x201   :  { %v312_v39 = vpop.permute.xlu0 %311 }
 0x202   :  { %v3585_v40 = vadd.f32 %v312_v39, %v304_v38 }
 0x204   :  { %3219 = vtanh.f32 %v3585_v40 }
 0x20e   :  { %v3220_v55 = vpop.eup %3219 }
 0x20f   :  { %317 = vrot.lane.b32.xlu1 %v3220_v55, %s3421_s7  ;;  %v182_v55 = vadd.f32 %v3576_v24, %v3637_v59 }
 0x281   :  { %v318_v56 = vpop.permute.xlu1 %317 }
 0x282   :  { %v320_v57 = vmul.f32 %v3218_v35, %v318_v56 }
 0x284   :  { %392 = vrot.lane.b32.xlu1 %v320_v57, %s3422_s22 }
 0x2f6   :  { %v393_v62 = vpop.permute.xlu1 %392 }
 0x2f7   :  { %2786 = vmatmul.mubr.msk.f32.vlgmr.msra.gmra.mrb[4].mxu0 %vm80_vm0, %v393_v62  ;;  %2797 = vmatmul.mubr.msk.f32.vlgmr.msra.gmra.mrb[8].mxu1 %vm80_vm0, %v393_v62 }
 0x2f8   :  { %3079 = vmatpush3.bf16.msra.mxu1 %v3596_v48  ;;  %3073 = vmatpush3.bf16.msra.mxu0 %v3588_v44 }
 0x2f9   :  { %3080 = vmatprep.subr.bf16.mxu1 %v3418_v13  ;;  %3074 = vmatprep.subr.bf16.mxu0 %v3418_v13 }
 0x2fa   :  { %2818 = vmatprep.mubr.msk.f32.mxu1 %vm3419_vm1, %v3420_v19  ;;  %2807 = vmatprep.mubr.msk.f32.mxu0 %vm3419_vm1, %v3420_v19 }
 0x2fc   :  { %3082 = vmatpush3.bf16.msra.mxu1 %v3616_v54  ;;  %3076 = vmatpush3.bf16.msra.mxu0 %v3608_v52 }
 0x2fd   :  { %3083 = vmatprep.subr.bf16.mxu0 %v3418_v13  ;;  %3089 = vmatprep.subr.bf16.mxu1 %v3418_v13 }
 0x3ca   :  { %v462_v1 = vpop.f32.mrb[4].mxu0  ;;  %v563_v2 = vpop.f32.mrb[8].mxu1 }
 0x3cb   :  { %v463_v3 = vadd.f32 %v462_v1, %v387_v60  ;;  %v567_v4 = vadd.f32 %v563_v2, %v177_v63  ;;  %v2787_v5 = vpop.f32.mrb[5].mxu0  ;;  %v2798_v6 = vpop.f32.mrb[9].mxu1 }
 0x3cd   :  { %v472_v7 = vadd.f32 %v3658_v0, %v463_v3  ;;  %3221 = vtanh.f32 %v567_v4  ;;  %v2548_v10 = vmul.f32 -1.442695, %v567_v4 }
 0x3cf   :  { %3223 = vtanh.f32 %v472_v7  ;;  %v2546_v12 = vmul.f32 -1.442695, %v472_v7 }
 0x3d0   :  { %3225 = vpow2.f32 %v2548_v10 }
 0x3d1   :  { %3227 = vpow2.f32 %v2546_v12 }
 0x3d7   :  { %v3222_v8 = vpop.eup %3221 }
 0x3d8   :  { %577 = vrot.lane.b32.xlu1 %v3222_v8, %s3421_s7 }
 0x3d9   :  { %v3224_v9 = vpop.eup %3223 }
 0x3da   :  { %482 = vrot.lane.b32.xlu0 %v3224_v9, %s3421_s7  ;;  %v3226_v14 = vpop.eup %3225 }
 0x3db   :  { %v3228_v15 = vpop.eup %3227  ;;  %v571_v16 = vadd.f32 1.0, %v3226_v14 }
 0x3dc   :  { %v476_v17 = vadd.f32 1.0, %v3228_v15 }
 0x3dd   :  { %3229 = vrcp.f32 %v571_v16 }
 0x3de   :  { %3231 = vrcp.f32 %v476_v17 }
 0x3e7   :  { %v3230_v21 = vpop.eup %3229 }
 0x3e8   :  { %v3232_v28 = vpop.eup %3231  ;;  %v575_v31 = vmul.f32 %v3230_v21, %v3585_v40 }
 0x3e9   :  { %v480_v34 = vmul.f32 0.0, %v3232_v28 }
 0x44a   :  { %v578_v23 = vpop.permute.xlu1 %577 }
 0x44b   :  { %v580_v27 = vmul.f32 %v3230_v21, %v578_v23 }
 0x44c   :  { %v483_v29 = vpop.permute.xlu0 %482 }
 0x44d   :  { %v485_v30 = vmul.f32 %v3232_v28, %v483_v29  ;;  %582 = vrot.lane.b32.xlu1 %v580_v27, %s3422_s22 }
 0x44f   :  { %487 = vrot.lane.b32.xlu0 %v485_v30, %s3422_s22 }
 0x4bf   :  { %v583_v32 = vpop.permute.xlu1 %582 }
 0x4c0   :  { %v3666_v33 = vadd.f32 %v583_v32, %v575_v31 }
 0x4c1   :  { %v488_v35 = vpop.permute.xlu0 %487 }
 0x4c2   :  { %3233 = vtanh.f32 %v3666_v33  ;;  %v3669_v36 = vadd.f32 %v488_v35, %v480_v34 }
 0x4c4   :  { %3235 = vtanh.f32 %v3669_v36 }
 0x4cc   :  { %v3234_v37 = vpop.eup %3233 }
 0x4cd   :  { %588 = vrot.lane.b32.xlu1 %v3234_v37, %s3421_s7  ;;  %v187_v37 = vadd.f32 %v3635_v58, %v3576_v24 }
 0x4ce   :  { %v3236_v38 = vpop.eup %3235 }
 0x4cf   :  { %493 = vrot.lane.b32.xlu0 %v3236_v38, %s3421_s7 }
 0x53f   :  { %v589_v39 = vpop.permute.xlu1 %588 }
 0x540   :  { %v591_v41 = vmul.f32 %v3230_v21, %v589_v39 }
 0x541   :  { %v494_v40 = vpop.permute.xlu0 %493 }
 0x542   :  { %v496_v42 = vmul.f32 %v3232_v28, %v494_v40  ;;  %668 = vrot.lane.b32.xlu1 %v591_v41, %s3422_s22 }
 0x544   :  { %593 = vrot.lane.b32.xlu0 %v496_v42, %s3422_s22 }
 0x5b4   :  { %v669_v43 = vpop.permute.xlu1 %668 }
 0x5b5   :  { %2819 = vmatmul.mubr.msk.f32.vlgmr.msra.gmra.mrb[10].mxu1 %vm80_vm0, %v669_v43 }
 0x5b6   :  { %v3677_v45 = vpop.permute.xlu0 %593  ;;  %3091 = vmatpush3.bf16.msra.mxu1 %v3588_v44  ;;  %2840 = vmatprep.mubr.msk.f32.mxu1 %vm3419_vm1, %v3420_v19 }
 0x5b7   :  { %2808 = vmatmul.mubr.msk.f32.vlgmr.msra.gmra.mrb[6].mxu0 %vm80_vm0, %v3677_v45  ;;  %3092 = vmatprep.subr.bf16.mxu1 %v3418_v13 }
 0x5b8   :  { %3085 = vmatpush3.bf16.msra.mxu0 %v3533_v11  ;;  %2829 = vmatprep.mubr.msk.f32.mxu0 %vm3419_vm1, %v3420_v19 }
 0x5b9   :  { %3086 = vmatprep.subr.bf16.mxu0 %v3418_v13 }
 0x5ba   :  { %3094 = vmatpush3.bf16.msra.mxu1 %v3608_v52 }
 0x5bb   :  { %3101 = vmatprep.subr.bf16.mxu1 %v3418_v13 }
 0x5bc   :  { %3088 = vmatpush3.bf16.msra.mxu0 %v3556_v18 }
 0x5bd   :  { %3095 = vmatprep.subr.bf16.mxu0 %v3418_v13 }
 0x5bf   :  { %2830 = vmatmul.mubr.msk.f32.vlgmr.msra.gmra.mrb[8].mxu0 %vm80_vm0, %v669_v43 }
 0x5c0   :  { %3097 = vmatpush3.bf16.msra.mxu0 %v3596_v48  ;;  %2851 = vmatprep.mubr.msk.f32.mxu0 %vm3419_vm1, %v3420_v19 }
 0x5c1   :  { %3098 = vmatprep.subr.bf16.mxu0 %v3418_v13 }
 0x5c4   :  { %3100 = vmatpush3.bf16.msra.mxu0 %v3616_v54 }
 0x5c5   :  { %3107 = vmatprep.subr.bf16.mxu0 %v3418_v13 }
 0x688   :  { %v738_v46 = vpop.f32.mrb[10].mxu1 }
 0x689   :  { %v2820_v47 = vpop.f32.mrb[11].mxu1 }
 0x68a   :  { %v663_v49 = vpop.f32.mrb[6].mxu0 }
 0x68b   :  { %v739_v50 = vadd.f32 %v738_v46, %v663_v49  ;;  %v2809_v51 = vpop.f32.mrb[7].mxu0 }
 0x68d   :  { %v742_v53 = vadd.f32 %v3658_v0, %v739_v50 }
 0x68f   :  { %3237 = vtanh.f32 %v742_v53  ;;  %v2551_v63 = vmul.f32 -1.442695, %v742_v53 }
 0x692   :  { %v833_v56 = vpop.f32.mrb[8].mxu0 }
 0x693   :  { %v837_v57 = vadd.f32 %v833_v56, %v182_v55  ;;  %v2831_v60 = vpop.f32.mrb[9].mxu0 }
 0x695   :  { %3239 = vtanh.f32 %v837_v57  ;;  %v2553_v1 = vmul.f32 -1.442695, %v837_v57 }
 0x696   :  { %3241 = vpow2.f32 %v2551_v63 }
 0x697   :  { %3243 = vpow2.f32 %v2553_v1 }
 0x699   :  { %v3238_v61 = vpop.eup %3237 }
 0x69a   :  { %752 = vrot.lane.b32.xlu0 %v3238_v61, %s3421_s7 }
 0x69f   :  { %v3240_v62 = vpop.eup %3239 }
 0x6a0   :  { %847 = vrot.lane.b32.xlu1 %v3240_v62, %s3421_s7  ;;  %v3242_v2 = vpop.eup %3241 }
 0x6a1   :  { %v746_v3 = vadd.f32 1.0, %v3242_v2  ;;  %v3244_v4 = vpop.eup %3243 }
 0x6a2   :  { %v841_v5 = vadd.f32 1.0, %v3244_v4 }
 0x6a3   :  { %3245 = vrcp.f32 %v746_v3 }
 0x6a4   :  { %3247 = vrcp.f32 %v841_v5 }
 0x6ad   :  { %v3246_v59 = vpop.eup %3245 }
 0x6ae   :  { %v3248_v8 = vpop.eup %3247  ;;  %v750_v12 = vmul.f32 %v3246_v59, %v3669_v36 }
 0x6af   :  { %v845_v16 = vmul.f32 %v3248_v8, %v3666_v33 }
 0x70c   :  { %v753_v6 = vpop.permute.xlu0 %752 }
 0x70d   :  { %v755_v7 = vmul.f32 %v3246_v59, %v753_v6 }
 0x70f   :  { %757 = vrot.lane.b32.xlu0 %v755_v7, %s3422_s22 }
 0x712   :  { %v848_v9 = vpop.permute.xlu1 %847 }
 0x713   :  { %v850_v10 = vmul.f32 %v3248_v8, %v848_v9 }
 0x715   :  { %852 = vrot.lane.b32.xlu1 %v850_v10, %s3422_s22 }
 0x781   :  { %v758_v14 = vpop.permute.xlu0 %757 }
 0x782   :  { %v3708_v15 = vadd.f32 %v758_v14, %v750_v12 }
 0x784   :  { %3249 = vtanh.f32 %v3708_v15 }
 0x787   :  { %v853_v17 = vpop.permute.xlu1 %852 }
 0x788   :  { %v3712_v21 = vadd.f32 %v853_v17, %v845_v16 }
 0x78a   :  { %3251 = vtanh.f32 %v3712_v21 }
 0x78e   :  { %v3250_v23 = vpop.eup %3249 }
 0x78f   :  { %763 = vrot.lane.b32.xlu0 %v3250_v23, %s3421_s7 }
 0x794   :  { %v3252_v27 = vpop.eup %3251 }
 0x795   :  { %858 = vrot.lane.b32.xlu1 %v3252_v27, %s3421_s7 }
 0x801   :  { %v764_v28 = vpop.permute.xlu0 %763 }
 0x802   :  { %v766_v29 = vmul.f32 %v3246_v59, %v764_v28 }
 0x804   :  { %863 = vrot.lane.b32.xlu0 %v766_v29, %s3422_s22  ;;  %v192_v29 = vadd.f32 %v3576_v24, %v3571_v22 }
 0x807   :  { %v859_v30 = vpop.permute.xlu1 %858 }
 0x808   :  { %v861_v31 = vmul.f32 %v3248_v8, %v859_v30 }
 0x80a   :  { %938 = vrot.lane.b32.xlu1 %v861_v31, %s3422_s22 }
 0x876   :  { %v3719_v32 = vpop.permute.xlu0 %863 }
 0x877   :  { %2841 = vmatmul.mubr.msk.f32.vlgmr.msra.gmra.mrb[12].mxu1 %vm80_vm0, %v3719_v32 }
 0x878   :  { %3103 = vmatpush3.bf16.msra.mxu1 %v3533_v11  ;;  %2862 = vmatprep.mubr.msk.f32.mxu1 %vm3419_vm1, %v3420_v19 }
 0x879   :  { %3104 = vmatprep.subr.bf16.mxu1 %v3418_v13 }
 0x87c   :  { %3106 = vmatpush3.bf16.msra.mxu1 %v3556_v18  ;;  %v939_v33 = vpop.permute.xlu1 %938 }
 0x87d   :  { %2852 = vmatmul.mubr.msk.f32.vlgmr.msra.gmra.mrb[10].mxu0 %vm80_vm0, %v939_v33  ;;  %3113 = vmatprep.subr.bf16.mxu1 %v3418_v13 }
 0x87e   :  { %3109 = vmatpush3.bf16.msra.mxu0 %v3588_v44  ;;  %2873 = vmatprep.mubr.msk.f32.mxu0 %vm3419_vm1, %v3420_v19 }
 0x87f   :  { %2863 = vmatmul.mubr.msk.f32.vlgmr.msra.gmra.mrb[14].mxu1 %vm80_vm0, %v939_v33  ;;  %3110 = vmatprep.subr.bf16.mxu0 %v3418_v13 }
 0x880   :  { %3115 = vmatpush3.bf16.msra.mxu1 %v3596_v48  ;;  %2884 = vmatprep.mubr.msk.f32.mxu1 %vm3419_vm1, %v3420_v19 }
 0x881   :  { %3116 = vmatprep.subr.bf16.mxu1 %v3418_v13 }
 0x882   :  { %3112 = vmatpush3.bf16.msra.mxu0 %v3608_v52 }
 0x883   :  { %3119 = vmatprep.subr.bf16.mxu0 %v3418_v13 }
 0x884   :  { %3118 = vmatpush3.bf16.msra.mxu1 %v3616_v54 }
 0x885   :  { %3125 = vmatprep.subr.bf16.mxu1 %v3418_v13 }
 0x94a   :  { %v933_v34 = vpop.f32.mrb[12].mxu1 }
 0x94b   :  { %v2842_v35 = vpop.f32.mrb[13].mxu1 }
 0x950   :  { %v1008_v36 = vpop.f32.mrb[10].mxu0 }
 0x951   :  { %v1009_v38 = vadd.f32 %v1008_v36, %v933_v34  ;;  %v2853_v39 = vpop.f32.mrb[11].mxu0 }
 0x952   :  { %v1103_v41 = vpop.f32.mrb[14].mxu1 }
 0x953   :  { %v1012_v40 = vadd.f32 %v3658_v0, %v1009_v38  ;;  %v1107_v42 = vadd.f32 %v1103_v41, %v187_v37  ;;  %v2864_v43 = vpop.f32.mrb[15].mxu1 }
 0x955   :  { %3253 = vtanh.f32 %v1012_v40  ;;  %v2556_v49 = vmul.f32 -1.442695, %v1012_v40  ;;  %v2558_v50 = vmul.f32 -1.442695, %v1107_v42 }
 0x956   :  { %3255 = vtanh.f32 %v1107_v42 }
 0x957   :  { %3257 = vpow2.f32 %v2556_v49 }
 0x958   :  { %3259 = vpow2.f32 %v2558_v50 }
 0x95f   :  { %v3254_v46 = vpop.eup %3253 }
 0x960   :  { %v3256_v47 = vpop.eup %3255  ;;  %1022 = vrot.lane.b32.xlu0 %v3254_v46, %s3421_s7 }
 0x961   :  { %1117 = vrot.lane.b32.xlu1 %v3256_v47, %s3421_s7  ;;  %v3258_v58 = vpop.eup %3257 }
 0x962   :  { %v3260_v51 = vpop.eup %3259  ;;  %v1016_v53 = vadd.f32 1.0, %v3258_v58 }
 0x963   :  { %v1111_v55 = vadd.f32 1.0, %v3260_v51 }
 0x964   :  { %3261 = vrcp.f32 %v1016_v53 }
 0x965   :  { %3263 = vrcp.f32 %v1111_v55 }
 0x96e   :  { %v3262_v56 = vpop.eup %3261 }
 0x96f   :  { %v3264_v60 = vpop.eup %3263  ;;  %v1020_v1 = vmul.f32 %v3262_v56, %v3708_v15 }
 0x970   :  { %v1115_v2 = vmul.f32 %v3264_v60, %v3712_v21 }
 0x9d2   :  { %v1023_v57 = vpop.permute.xlu0 %1022 }
 0x9d3   :  { %v1118_v61 = vpop.permute.xlu1 %1117  ;;  %v1025_v62 = vmul.f32 %v3262_v56, %v1023_v57 }
 0x9d4   :  { %v1120_v63 = vmul.f32 %v3264_v60, %v1118_v61 }
 0x9d5   :  { %1027 = vrot.lane.b32.xlu0 %v1025_v62, %s3422_s22 }
 0x9d6   :  { %1122 = vrot.lane.b32.xlu1 %v1120_v63, %s3422_s22 }
 0xa47   :  { %v1028_v3 = vpop.permute.xlu0 %1027 }
 0xa48   :  { %v1123_v4 = vpop.permute.xlu1 %1122  ;;  %v3752_v5 = vadd.f32 %v1028_v3, %v1020_v1 }
 0xa49   :  { %v3754_v59 = vadd.f32 %v1123_v4, %v1115_v2 }
 0xa4a   :  { %3265 = vtanh.f32 %v3752_v5 }
 0xa4b   :  { %3267 = vtanh.f32 %v3754_v59 }
 0xa54   :  { %v3266_v6 = vpop.eup %3265 }
 0xa55   :  { %v3268_v7 = vpop.eup %3267  ;;  %1033 = vrot.lane.b32.xlu0 %v3266_v6, %s3421_s7 }
 0xa56   :  { %1128 = vrot.lane.b32.xlu1 %v3268_v7, %s3421_s7 }
 0xac7   :  { %v1034_v8 = vpop.permute.xlu0 %1033 }
 0xac8   :  { %v1129_v9 = vpop.permute.xlu1 %1128  ;;  %v1036_v10 = vmul.f32 %v3262_v56, %v1034_v8  ;;  %v197_v8 = vadd.f32 %v3567_v20, %v3576_v24 }
 0xac9   :  { %v1131_v12 = vmul.f32 %v3264_v60, %v1129_v9 }
 0xaca   :  { %1133 = vrot.lane.b32.xlu0 %v1036_v10, %s3422_s22 }
 0xacb   :  { %1208 = vrot.lane.b32.xlu1 %v1131_v12, %s3422_s22 }
 0xb3c   :  { %v3762_v14 = vpop.permute.xlu0 %1133 }
 0xb3d   :  { %v1209_v15 = vpop.permute.xlu1 %1208  ;;  %2874 = vmatmul.mubr.msk.f32.vlgmr.msra.gmra.mrb[12].mxu0 %vm80_vm0, %v3762_v14 }
 0xb3e   :  { %2885 = vmatmul.mubr.msk.f32.vlgmr.msra.gmra.mrb[16].mxu1 %vm80_vm0, %v1209_v15  ;;  %3121 = vmatpush3.bf16.msra.mxu0 %v3533_v11 }
 0xb3f   :  { %3122 = vmatprep.subr.bf16.mxu0 %v3418_v13  ;;  %2895 = vmatprep.mubr.msk.f32.mxu0 %vm3419_vm1, %v3420_v19 }
 0xb40   :  { %3127 = vmatpush3.bf16.msra.mxu1 %v3588_v44  ;;  %2906 = vmatprep.mubr.msk.f32.mxu1 %vm3419_vm1, %v3420_v19 }
 0xb41   :  { %3128 = vmatprep.subr.bf16.mxu1 %v3418_v13 }
 0xb42   :  { %3124 = vmatpush3.bf16.msra.mxu0 %v3556_v18 }
 0xb43   :  { %3131 = vmatprep.subr.bf16.mxu0 %v3418_v13 }
 0xb44   :  { %3130 = vmatpush3.bf16.msra.mxu1 %v3608_v52 }
 0xb45   :  { %2896 = vmatmul.mubr.msk.f32.vlgmr.msra.gmra.mrb[14].mxu0 %vm80_vm0, %v1209_v15  ;;  %3137 = vmatprep.subr.bf16.mxu1 %v3418_v13 }
 0xb46   :  { %3133 = vmatpush3.bf16.msra.mxu0 %v3596_v48  ;;  %2917 = vmatprep.mubr.msk.f32.mxu0 %vm3419_vm1, %v3420_v19 }
 0xb47   :  { %3134 = vmatprep.subr.bf16.mxu0 %v3418_v13 }
 0xb4a   :  { %3136 = vmatpush3.bf16.msra.mxu0 %v3616_v54 }
 0xb4b   :  { %3143 = vmatprep.subr.bf16.mxu0 %v3418_v13 }
 0xc10   :  { %v1203_v16 = vpop.f32.mrb[12].mxu0 }
 0xc11   :  { %v1278_v17 = vpop.f32.mrb[16].mxu1  ;;  %v2875_v21 = vpop.f32.mrb[13].mxu0 }
 0xc12   :  { %v1279_v23 = vadd.f32 %v1278_v17, %v1203_v16  ;;  %v2886_v27 = vpop.f32.mrb[17].mxu1 }
 0xc14   :  { %v1282_v28 = vadd.f32 %v3658_v0, %v1279_v23 }
 0xc16   :  { %3269 = vtanh.f32 %v1282_v28  ;;  %v2561_v36 = vmul.f32 -1.442695, %v1282_v28 }
 0xc18   :  { %v1373_v30 = vpop.f32.mrb[14].mxu0 }
 0xc19   :  { %v1377_v31 = vadd.f32 %v1373_v30, %v192_v29  ;;  %v2897_v33 = vpop.f32.mrb[15].mxu0 }
 0xc1b   :  { %3271 = vtanh.f32 %v1377_v31  ;;  %v2563_v37 = vmul.f32 -1.442695, %v1377_v31 }
 0xc1c   :  { %3273 = vpow2.f32 %v2561_v36 }
 0xc1d   :  { %3275 = vpow2.f32 %v2563_v37 }
 0xc20   :  { %v3270_v34 = vpop.eup %3269 }
 0xc21   :  { %1292 = vrot.lane.b32.xlu0 %v3270_v34, %s3421_s7 }
 0xc25   :  { %v3272_v35 = vpop.eup %3271 }
 0xc26   :  { %1387 = vrot.lane.b32.xlu1 %v3272_v35, %s3421_s7  ;;  %v3274_v38 = vpop.eup %3273 }
 0xc27   :  { %v1286_v39 = vadd.f32 1.0, %v3274_v38  ;;  %v3276_v41 = vpop.eup %3275 }
 0xc28   :  { %v1381_v40 = vadd.f32 1.0, %v3276_v41 }
 0xc29   :  { %3277 = vrcp.f32 %v1286_v39 }
 0xc2a   :  { %3279 = vrcp.f32 %v1381_v40 }
 0xc33   :  { %v3278_v22 = vpop.eup %3277 }
 0xc34   :  { %v3280_v46 = vpop.eup %3279  ;;  %v1290_v50 = vmul.f32 %v3278_v22, %v3752_v5 }
 0xc35   :  { %v1385_v53 = vmul.f32 %v3280_v46, %v3754_v59 }
 0xc93   :  { %v1293_v42 = vpop.permute.xlu0 %1292 }
 0xc94   :  { %v1295_v43 = vmul.f32 %v3278_v22, %v1293_v42 }
 0xc96   :  { %1297 = vrot.lane.b32.xlu0 %v1295_v43, %s3422_s22 }
 0xc98   :  { %v1388_v47 = vpop.permute.xlu1 %1387 }
 0xc99   :  { %v1390_v49 = vmul.f32 %v3280_v46, %v1388_v47 }
 0xc9b   :  { %1392 = vrot.lane.b32.xlu1 %v1390_v49, %s3422_s22 }
 0xd08   :  { %v1298_v58 = vpop.permute.xlu0 %1297 }
 0xd09   :  { %v3794_v51 = vadd.f32 %v1298_v58, %v1290_v50 }
 0xd0b   :  { %3281 = vtanh.f32 %v3794_v51 }
 0xd0d   :  { %v1393_v55 = vpop.permute.xlu1 %1392 }
 0xd0e   :  { %v3798_v56 = vadd.f32 %v1393_v55, %v1385_v53 }
 0xd10   :  { %3283 = vtanh.f32 %v3798_v56 }
 0xd15   :  { %v3282_v57 = vpop.eup %3281 }
 0xd16   :  { %1303 = vrot.lane.b32.xlu0 %v3282_v57, %s3421_s7 }
 0xd1a   :  { %v3284_v60 = vpop.eup %3283 }
 0xd1b   :  { %1398 = vrot.lane.b32.xlu1 %v3284_v60, %s3421_s7 }
 0xd88   :  { %v1304_v61 = vpop.permute.xlu0 %1303 }
 0xd89   :  { %v1306_v62 = vmul.f32 %v3278_v22, %v1304_v61 }
 0xd8b   :  { %1403 = vrot.lane.b32.xlu0 %v1306_v62, %s3422_s22  ;;  %v202_v62 = vadd.f32 %v3576_v24, %v3580_v26 }
 0xd8d   :  { %v1399_v63 = vpop.permute.xlu1 %1398 }
 0xd8e   :  { %v1401_v1 = vmul.f32 %v3280_v46, %v1399_v63 }
 0xd90   :  { %1478 = vrot.lane.b32.xlu1 %v1401_v1, %s3422_s22 }
 0xdfd   :  { %v3805_v2 = vpop.permute.xlu0 %1403 }
 0xdfe   :  { %2907 = vmatmul.mubr.msk.f32.vlgmr.msra.gmra.mrb[18].mxu1 %vm80_vm0, %v3805_v2 }
 0xdff   :  { %3139 = vmatpush3.bf16.msra.mxu1 %v3533_v11  ;;  %2928 = vmatprep.mubr.msk.f32.mxu1 %vm3419_vm1, %v3420_v19 }
 0xe00   :  { %3140 = vmatprep.subr.bf16.mxu1 %v3418_v13 }
 0xe02   :  { %v1479_v3 = vpop.permute.xlu1 %1478 }
 0xe03   :  { %3142 = vmatpush3.bf16.msra.mxu1 %v3556_v18  ;;  %2918 = vmatmul.mubr.msk.f32.vlgmr.msra.gmra.mrb[16].mxu0 %vm80_vm0, %v1479_v3 }
 0xe04   :  { %3145 = vmatpush3.bf16.msra.mxu0 %v3588_v44  ;;  %3149 = vmatprep.subr.bf16.mxu1 %v3418_v13 }
 0xe05   :  { %3146 = vmatprep.subr.bf16.mxu0 %v3418_v13  ;;  %2939 = vmatprep.mubr.msk.f32.mxu0 %vm3419_vm1, %v3420_v19 }
 0xe06   :  { %2929 = vmatmul.mubr.msk.f32.vlgmr.msra.gmra.mrb[20].mxu1 %vm80_vm0, %v1479_v3 }
 0xe07   :  { %3151 = vmatpush3.bf16.msra.mxu1 %v3596_v48  ;;  %2950 = vmatprep.mubr.msk.f32.mxu1 %vm3419_vm1, %v3420_v19 }
 0xe08   :  { %3148 = vmatpush3.bf16.msra.mxu0 %v3608_v52  ;;  %3152 = vmatprep.subr.bf16.mxu1 %v3418_v13 }
 0xe09   :  { %3155 = vmatprep.subr.bf16.mxu0 %v3418_v13 }
 0xe0b   :  { %3154 = vmatpush3.bf16.msra.mxu1 %v3616_v54 }
 0xe0c   :  { %3161 = vmatprep.subr.bf16.mxu1 %v3418_v13 }
 0xed1   :  { %v1473_v4 = vpop.f32.mrb[18].mxu1 }
 0xed2   :  { %v2908_v5 = vpop.f32.mrb[19].mxu1 }
 0xed6   :  { %v1548_v59 = vpop.f32.mrb[16].mxu0 }
 0xed7   :  { %v1549_v6 = vadd.f32 %v1548_v59, %v1473_v4  ;;  %v2919_v7 = vpop.f32.mrb[17].mxu0 }
 0xed9   :  { %v1552_v9 = vadd.f32 %v3658_v0, %v1549_v6  ;;  %v1643_v10 = vpop.f32.mrb[20].mxu1 }
 0xeda   :  { %v1647_v12 = vadd.f32 %v1643_v10, %v197_v8  ;;  %v2930_v15 = vpop.f32.mrb[21].mxu1 }
 0xedb   :  { %3285 = vtanh.f32 %v1552_v9  ;;  %v2566_v21 = vmul.f32 -1.442695, %v1552_v9 }
 0xedc   :  { %3287 = vtanh.f32 %v1647_v12  ;;  %v2568_v23 = vmul.f32 -1.442695, %v1647_v12 }
 0xedd   :  { %3289 = vpow2.f32 %v2566_v21 }
 0xede   :  { %3291 = vpow2.f32 %v2568_v23 }
 0xee5   :  { %v3286_v16 = vpop.eup %3285 }
 0xee6   :  { %v3288_v17 = vpop.eup %3287  ;;  %1562 = vrot.lane.b32.xlu0 %v3286_v16, %s3421_s7 }
 0xee7   :  { %1657 = vrot.lane.b32.xlu1 %v3288_v17, %s3421_s7  ;;  %v3290_v27 = vpop.eup %3289 }
 0xee8   :  { %v3292_v28 = vpop.eup %3291  ;;  %v1556_v20 = vadd.f32 1.0, %v3290_v27 }
 0xee9   :  { %v1651_v29 = vadd.f32 1.0, %v3292_v28 }
 0xeea   :  { %3293 = vrcp.f32 %v1556_v20 }
 0xeeb   :  { %3295 = vrcp.f32 %v1651_v29 }
 0xef4   :  { %v3294_v30 = vpop.eup %3293 }
 0xef5   :  { %v3296_v33 = vpop.eup %3295  ;;  %v1560_v37 = vmul.f32 %v3294_v30, %v3794_v51 }
 0xef6   :  { %v1655_v38 = vmul.f32 %v3296_v33, %v3798_v56 }
 0xf58   :  { %v1563_v31 = vpop.permute.xlu0 %1562 }
 0xf59   :  { %v1658_v34 = vpop.permute.xlu1 %1657  ;;  %v1565_v35 = vmul.f32 %v3294_v30, %v1563_v31 }
 0xf5a   :  { %v1660_v36 = vmul.f32 %v3296_v33, %v1658_v34 }
 0xf5b   :  { %1567 = vrot.lane.b32.xlu0 %v1565_v35, %s3422_s22 }
 0xf5c   :  { %1662 = vrot.lane.b32.xlu1 %v1660_v36, %s3422_s22 }
 0xfcd   :  { %v1568_v39 = vpop.permute.xlu0 %1567 }
 0xfce   :  { %v1663_v41 = vpop.permute.xlu1 %1662  ;;  %v3838_v40 = vadd.f32 %v1568_v39, %v1560_v37 }
 0xfcf   :  { %v3840_v22 = vadd.f32 %v1663_v41, %v1655_v38 }
 0xfd0   :  { %3297 = vtanh.f32 %v3838_v40 }
 0xfd1   :  { %3299 = vtanh.f32 %v3840_v22 }
 0xfda   :  { %v3298_v42 = vpop.eup %3297 }
 0xfdb   :  { %v3300_v43 = vpop.eup %3299  ;;  %1573 = vrot.lane.b32.xlu0 %v3298_v42, %s3421_s7 }
 0xfdc   :  { %1668 = vrot.lane.b32.xlu1 %v3300_v43, %s3421_s7 }
0x104d   :  { %v1574_v46 = vpop.permute.xlu0 %1573 }
0x104e   :  { %v1669_v47 = vpop.permute.xlu1 %1668  ;;  %v1576_v49 = vmul.f32 %v3294_v30, %v1574_v46 }
0x104f   :  { %v1671_v50 = vmul.f32 %v3296_v33, %v1669_v47 }
0x1050   :  { %1673 = vrot.lane.b32.xlu0 %v1576_v49, %s3422_s22 }
0x1051   :  { %1748 = vrot.lane.b32.xlu1 %v1671_v50, %s3422_s22 }
0x10c2   :  { %v3848_v58 = vpop.permute.xlu0 %1673 }
0x10c3   :  { %v1749_v51 = vpop.permute.xlu1 %1748  ;;  %2940 = vmatmul.mubr.msk.f32.vlgmr.msra.gmra.mrb[18].mxu0 %vm80_vm0, %v3848_v58 }
0x10c4   :  { %2951 = vmatmul.mubr.msk.f32.vlgmr.msra.gmra.mrb[22].mxu1 %vm80_vm0, %v1749_v51  ;;  %3157 = vmatpush3.bf16.msra.mxu0 %v3533_v11 }
0x10c5   :  { %3158 = vmatprep.subr.bf16.mxu0 %v3418_v13  ;;  %2961 = vmatprep.mubr.msk.f32.mxu0 %vm3419_vm1, %v3420_v19 }
0x10c6   :  { %3163 = vmatpush3.bf16.msra.mxu1 %v3588_v44  ;;  %2972 = vmatprep.mubr.msk.f32.mxu1 %vm3419_vm1, %v3420_v19 }
0x10c7   :  { %3164 = vmatprep.subr.bf16.mxu1 %v3418_v13 }
0x10c8   :  { %3160 = vmatpush3.bf16.msra.mxu0 %v3556_v18 }
0x10c9   :  { %3167 = vmatprep.subr.bf16.mxu0 %v3418_v13 }
0x10ca   :  { %3166 = vmatpush3.bf16.msra.mxu1 %v3608_v52 }
0x10cb   :  { %2962 = vmatmul.mubr.msk.f32.vlgmr.msra.gmra.mrb[20].mxu0 %vm80_vm0, %v1749_v51  ;;  %3173 = vmatprep.subr.bf16.mxu1 %v3418_v13 }
0x10cc   :  { %3169 = vmatpush3.bf16.msra.mxu0 %v3596_v48  ;;  %2983 = vmatprep.mubr.msk.f32.mxu0 %vm3419_vm1, %v3420_v19 }
0x10cd   :  { %3170 = vmatprep.subr.bf16.mxu0 %v3418_v13 }
0x10d0   :  { %3172 = vmatpush3.bf16.msra.mxu0 %v3616_v54 }
0x10d1   :  { %3179 = vmatprep.subr.bf16.mxu0 %v3418_v13 }
0x1196   :  { %v1743_v53 = vpop.f32.mrb[18].mxu0 }
0x1197   :  { %v1818_v55 = vpop.f32.mrb[22].mxu1  ;;  %v2941_v56 = vpop.f32.mrb[19].mxu0 }
0x1198   :  { %v1819_v57 = vadd.f32 %v1818_v55, %v1743_v53  ;;  %v2952_v60 = vpop.f32.mrb[23].mxu1 }
0x119a   :  { %v1822_v61 = vadd.f32 %v3658_v0, %v1819_v57 }
0x119c   :  { %3301 = vtanh.f32 %v1822_v61  ;;  %v2571_v59 = vmul.f32 -1.442695, %v1822_v61 }
0x119e   :  { %v1913_v63 = vpop.f32.mrb[20].mxu0 }
0x119f   :  { %v1917_v1 = vadd.f32 %v1913_v63, %v202_v62  ;;  %v2963_v3 = vpop.f32.mrb[21].mxu0 }
0x11a1   :  { %3303 = vtanh.f32 %v1917_v1  ;;  %v2573_v6 = vmul.f32 -1.442695, %v1917_v1 }
0x11a2   :  { %3305 = vpow2.f32 %v2571_v59 }
0x11a3   :  { %3307 = vpow2.f32 %v2573_v6  ;;  %v2387_v6 = vld [vmem:[#allocation5] sm:$0xff] }
0x11a6   :  { %v3302_v4 = vpop.eup %3301 }
0x11a7   :  { %1832 = vrot.lane.b32.xlu0 %v3302_v4, %s3421_s7 }
0x11ab   :  { %v3304_v5 = vpop.eup %3303 }
0x11ac   :  { %1927 = vrot.lane.b32.xlu1 %v3304_v5, %s3421_s7  ;;  %v3306_v7 = vpop.eup %3305 }
0x11ad   :  { %v1826_v8 = vadd.f32 1.0, %v3306_v7  ;;  %v3308_v9 = vpop.eup %3307  ;;  %v2388_v7 = vld [vmem:[#allocation5 + $0x8] sm:$0xff] }
0x11ae   :  { %v1921_v10 = vadd.f32 1.0, %v3308_v9 }
0x11af   :  { %3309 = vrcp.f32 %v1826_v8  ;;  %v3191_v8 = vpack.c.bf16 %v2388_v7, %v2387_v6 }
0x11b0   :  { %3311 = vrcp.f32 %v1921_v10 }
0x11b9   :  { %v3310_v24 = vpop.eup %3309 }
0x11ba   :  { %v3312_v15 = vpop.eup %3311  ;;  %v1830_v21 = vmul.f32 %v3310_v24, %v3838_v40  ;;  %v3341_v40 = vld [vmem:[%s3974_s3] ss:$0 sm:$0xff] }
0x11bb   :  { %v1925_v28 = vmul.f32 %v3312_v15, %v3840_v22 }
0x1219   :  { %v1833_v26 = vpop.permute.xlu0 %1832 }
0x121a   :  { %v1835_v12 = vmul.f32 %v3310_v24, %v1833_v26 }
0x121c   :  { %1837 = vrot.lane.b32.xlu0 %v1835_v12, %s3422_s22  ;;  %v2389_v12 = vld [vmem:[#allocation5 + $0x10] sm:$0xff] }
0x121e   :  { %v1928_v16 = vpop.permute.xlu1 %1927 }
0x121f   :  { %v1930_v17 = vmul.f32 %v3312_v15, %v1928_v16 }
0x1221   :  { %1932 = vrot.lane.b32.xlu1 %v1930_v17, %s3422_s22 }
0x128e   :  { %v1838_v23 = vpop.permute.xlu0 %1837 }
0x128f   :  { %v3880_v27 = vadd.f32 %v1838_v23, %v1830_v21 }
0x1291   :  { %3313 = vtanh.f32 %v3880_v27 }
0x1293   :  { %v1933_v20 = vpop.permute.xlu1 %1932 }
0x1294   :  { %v3884_v29 = vadd.f32 %v1933_v20, %v1925_v28 }
0x1296   :  { %3315 = vtanh.f32 %v3884_v29 }
0x129b   :  { %v3314_v30 = vpop.eup %3313 }
0x129c   :  { %1843 = vrot.lane.b32.xlu0 %v3314_v30, %s3421_s7 }
0x12a0   :  { %v3316_v31 = vpop.eup %3315 }
0x12a1   :  { %1938 = vrot.lane.b32.xlu1 %v3316_v31, %s3421_s7 }
0x130e   :  { %v1844_v33 = vpop.permute.xlu0 %1843 }
0x130f   :  { %v1846_v34 = vmul.f32 %v3310_v24, %v1844_v33 }
0x1311   :  { %1943 = vrot.lane.b32.xlu0 %v1846_v34, %s3422_s22 }
0x1313   :  { %v1939_v35 = vpop.permute.xlu1 %1938 }
0x1314   :  { %v1941_v36 = vmul.f32 %v3312_v15, %v1939_v35  ;;  %v2390_v15 = vld [vmem:[#allocation5 + $0x18] sm:$0xff] }
0x1315   :  { %v3195_v16 = vpack.c.bf16 %v2390_v15, %v2389_v12 }
0x1316   :  { %2018 = vrot.lane.b32.xlu1 %v1941_v36, %s3422_s22 }
0x1383   :  { %v3891_v37 = vpop.permute.xlu0 %1943 }
0x1384   :  { %2973 = vmatmul.mubr.msk.f32.vlgmr.msra.gmra.mrb[24].mxu1 %vm80_vm0, %v3891_v37 }
0x1385   :  { %3175 = vmatpush3.bf16.msra.mxu1 %v3533_v11  ;;  %2994 = vmatprep.mubr.msk.f32.mxu1 %vm3419_vm1, %v3420_v19 }
0x1386   :  { %3176 = vmatprep.subr.bf16.mxu1 %v3418_v13 }
0x1388   :  { %v2019_v38 = vpop.permute.xlu1 %2018 }
0x1389   :  { %3178 = vmatpush3.bf16.msra.mxu1 %v3556_v18  ;;  %2984 = vmatmul.mubr.msk.f32.vlgmr.msra.gmra.mrb[22].mxu0 %vm80_vm0, %v2019_v38 }
0x138a   :  { %3181 = vmatpush3.bf16.msra.mxu0 %v3588_v44  ;;  %3185 = vmatprep.subr.bf16.mxu1 %v3418_v13 }
0x138b   :  { %3182 = vmatprep.subr.bf16.mxu0 %v3418_v13  ;;  %3005 = vmatprep.mubr.msk.f32.mxu0 %vm3419_vm1, %v3420_v19 }
0x138c   :  { %2995 = vmatmul.mubr.msk.f32.vlgmr.msra.gmra.mrb[26].mxu1 %vm80_vm0, %v2019_v38 }
0x138d   :  { %3187 = vmatpush3.bf16.msra.mxu1 %v3596_v48  ;;  %3016 = vmatprep.mubr.msk.f32.mxu1 %vm3419_vm1, %v3420_v19  ;;  %v207_v48 = vadd.f32 %v3341_v40, %v3578_v25 }
0x138e   :  { %3184 = vmatpush3.bf16.msra.mxu0 %v3608_v52  ;;  %3188 = vmatprep.subr.bf16.mxu1 %v3418_v13 }
0x138f   :  { %3192 = vmatprep.subr.bf16.mxu0 %v3191_v8 }
0x1391   :  { %3190 = vmatpush3.bf16.msra.mxu1 %v3616_v54 }
0x1457   :  { %v2013_v11 = vpop.f32.mrb[24].mxu1 }
0x1458   :  { %v2974_v18 = vpop.f32.mrb[25].mxu1 }
0x145c   :  { %v2088_v44 = vpop.f32.mrb[22].mxu0 }
0x145d   :  { %v2089_v39 = vadd.f32 %v2088_v44, %v2013_v11  ;;  %v2985_v41 = vpop.f32.mrb[23].mxu0 }
0x145f   :  { %v2092_v22 = vadd.f32 %v3658_v0, %v2089_v39  ;;  %v2183_v19 = vpop.f32.mrb[26].mxu1 }
0x1460   :  { %v2187_v42 = vadd.f32 %v2183_v19, %v207_v48  ;;  %v2996_v52 = vpop.f32.mrb[27].mxu1 }
0x1461   :  { %3317 = vtanh.f32 %v2092_v22  ;;  %v2576_v43 = vmul.f32 -1.442695, %v2092_v22 }
0x1462   :  { %3319 = vtanh.f32 %v2187_v42  ;;  %v2578_v46 = vmul.f32 -1.442695, %v2187_v42 }
0x1463   :  { %3321 = vpow2.f32 %v2576_v43 }
0x1464   :  { %3323 = vpow2.f32 %v2578_v46 }
0x146b   :  { %v3318_v13 = vpop.eup %3317 }
0x146c   :  { %v3320_v54 = vpop.eup %3319  ;;  %2102 = vrot.lane.b32.xlu0 %v3318_v13, %s3421_s7 }
0x146d   :  { %2197 = vrot.lane.b32.xlu1 %v3320_v54, %s3421_s7  ;;  %v3322_v47 = vpop.eup %3321 }
0x146e   :  { %v3324_v49 = vpop.eup %3323  ;;  %v2096_v25 = vadd.f32 1.0, %v3322_v47 }
0x146f   :  { %v2191_v50 = vadd.f32 1.0, %v3324_v49 }
0x1470   :  { %3325 = vrcp.f32 %v2096_v25 }
0x1471   :  { %3327 = vrcp.f32 %v2191_v50 }
0x147a   :  { %v3326_v51 = vpop.eup %3325 }
0x147b   :  { %v3328_v55 = vpop.eup %3327  ;;  %v2100_v61 = vmul.f32 %v3326_v51, %v3880_v27 }
0x147c   :  { %v2195_v62 = vmul.f32 %v3328_v55, %v3884_v29 }
0x14de   :  { %v2103_v53 = vpop.permute.xlu0 %2102 }
0x14df   :  { %v2198_v56 = vpop.permute.xlu1 %2197  ;;  %v2105_v57 = vmul.f32 %v3326_v51, %v2103_v53 }
0x14e0   :  { %v2200_v60 = vmul.f32 %v3328_v55, %v2198_v56 }
0x14e1   :  { %2107 = vrot.lane.b32.xlu0 %v2105_v57, %s3422_s22 }
0x14e2   :  { %2202 = vrot.lane.b32.xlu1 %v2200_v60, %s3422_s22 }
0x1553   :  { %v2108_v63 = vpop.permute.xlu0 %2107 }
0x1554   :  { %v2203_v1 = vpop.permute.xlu1 %2202  ;;  %v3924_v3 = vadd.f32 %v2108_v63, %v2100_v61 }
0x1555   :  { %v2205_v4 = vadd.f32 %v2203_v1, %v2195_v62 }
0x1556   :  { %3329 = vtanh.f32 %v3924_v3 }
0x1557   :  { %3331 = vtanh.f32 %v2205_v4 }
0x1560   :  { %v3330_v5 = vpop.eup %3329 }
0x1561   :  { %v3332_v59 = vpop.eup %3331  ;;  %2113 = vrot.lane.b32.xlu0 %v3330_v5, %s3421_s7 }
0x1562   :  { %2208 = vrot.lane.b32.xlu1 %v3332_v59, %s3421_s7 }
0x15d3   :  { %v2114_v9 = vpop.permute.xlu0 %2113 }
0x15d4   :  { %v2209_v10 = vpop.permute.xlu1 %2208  ;;  %v2116_v24 = vmul.f32 %v3326_v51, %v2114_v9 }
0x15d5   :  { %v2211_v26 = vmul.f32 %v3328_v55, %v2209_v10 }
0x15d6   :  { %2213 = vrot.lane.b32.xlu0 %v2116_v24, %s3422_s22 }
0x15d7   :  { %2288 = vrot.lane.b32.xlu1 %v2211_v26, %s3422_s22 }
0x1648   :  { %v2214_v17 = vpop.permute.xlu0 %2213 }
0x1649   :  { %v2289_v21 = vpop.permute.xlu1 %2288  ;;  %3006 = vmatmul.mubr.msk.f32.vlgmr.msra.gmra.mrb[24].mxu0 %vm80_vm0, %v2214_v17 }
0x164a   :  { %3017 = vmatmul.mubr.msk.f32.vlgmr.msra.gmra.mrb[28].mxu1 %vm80_vm0, %v2289_v21  ;;  %3194 = vmatpush3.bf16.msra.mxu0 %v3191_v8 }
0x164b   :  { %3027 = vmatprep.mubr.msk.f32.mxu0 %vm80_vm0, %v3677_v45  ;;  %3196 = vmatprep.subr.bf16.mxu0 %v3195_v16 }
0x164e   :  { %3198 = vmatpush3.bf16.msra.mxu0 %v3195_v16 }
0x1651   :  { %3028 = vmatmul.mubr.msk.f32.vlgmr.msra.gmra.mrb[26].mxu0 %vm80_vm0, %v3719_v32 }
0x1652   :  { %3030 = vmatprep.mubr.msk.f32.mxu0 %vm80_vm0, %v3762_v14  ;;  %v2582_v14 = vld [vmem:[%s3979_s8] ss:$0 sm:$0xff]  ;;  %s3423_s8 = smov [#allocation7]  }
0x1653   :  { %s2521_s14 = sshll.u32 %s3423_s8, 4  ;;  %s2522_s14 = int_to_ptr.vmem [resolvable:$true] %s2521_s14 }
0x1654   :  { %s3386_s15 = scalar_lea.vmem %s2522_s14, 1024  ;;  %p3391_p3 = scmp.lt.s32.totalorder %s2522_s14, %s2522_s14 }
0x1655   :  { %3031 = vmatmul.mubr.msk.f32.gmra.mrb[28].mxu0 %vm80_vm0, %v3805_v2  ;;  %p3387_p2 = scmp.ne.s32.totalorder %s2522_s14, %s3386_s15  ;;  %p3392_p4 = scmp.lt.s32.totalorder %s3386_s15, %s3386_s15 }
0x1656   :  { %3033 = vmatprep.mubr.msk.f32.mxu0 %vm80_vm0, %v3848_v58 }
0x1657   :  { %p3393_p5 = por %p3392_p4, %p3391_p3 }
0x1659   :  { %3034 = vmatmul.mubr.msk.f32.gmra.mrb[30].mxu0 %vm80_vm0, %v3891_v37  ;;  %p3394_p6 = pnand %p3393_p5, %p3387_p2 }
0x165a   :  { %3036 = vmatprep.mubr.msk.f32.mxu0 %vm80_vm0, %v2214_v17 }
0x171c   :  { %v2283_v45 = vpop.f32.mrb[24].mxu0 }
0x171d   :  { %v2358_v23 = vpop.f32.mrb[28].mxu1  ;;  %v3007_v27 = vpop.f32.mrb[25].mxu0 }
0x171e   :  { %v2359_v28 = vadd.f32 %v2358_v23, %v2283_v45  ;;  %v3018_v20 = vpop.f32.mrb[29].mxu1 }
0x1720   :  { %v2362_v32 = vadd.f32 %v3658_v0, %v2359_v28 }
0x1722   :  { %3333 = vtanh.f32 %v2362_v32  ;;  %v2581_v18 = vmul.f32 -1.442695, %v2362_v32 }
0x1724   :  { %v3029_v2 = vpop.f32.mrb[26].mxu0  ;;  %3335 = vpow2.f32 %v2581_v18 }
0x1725   :  { %v2475_v29 = vadd.f32 %v3029_v2, %v2582_v14  ;;  %v2469_v58 = vpop.f32.mrb[27].mxu0 }
0x1726   :  { %v2470_v30 = vadd.f32 %v2582_v14, %v2469_v58 }
0x1727   :  { %2509 = vst [vmem:[#allocation7 + $0x8] sm:$0xff] %v2475_v29 }
0x1728   :  { %2508 = vst [vmem:[#allocation7] sm:$0xff] %v2470_v30  ;;  %v3032_v31 = vpop.f32.mrb[28].mxu0 }
0x1729   :  { %v2485_v33 = vadd.f32 %v3032_v31, %v2582_v14  ;;  %v2479_v34 = vpop.f32.mrb[29].mxu0 }
0x172a   :  { %v2480_v35 = vadd.f32 %v2582_v14, %v2479_v34 }
0x172b   :  { %2511 = vst [vmem:[#allocation7 + $0x18] sm:$0xff] %v2485_v33 }
0x172c   :  { %v3334_v36 = vpop.eup %3333  ;;  %2510 = vst [vmem:[#allocation7 + $0x10] sm:$0xff] %v2480_v35  ;;  %v3035_v37 = vpop.f32.mrb[30].mxu0 }
0x172d   :  { %v2495_v0 = vadd.f32 %v3035_v37, %v2582_v14  ;;  %2372 = vrot.lane.b32.xlu0 %v3334_v36, %s3421_s7  ;;  %v2489_v38 = vpop.f32.mrb[31].mxu0 }
0x172e   :  { %v2490_v11 = vadd.f32 %v2582_v14, %v2489_v38  ;;  %v3336_v44 = vpop.eup %3335 }
0x172f   :  { %2513 = vst [vmem:[#allocation7 + $0x28] sm:$0xff] %v2495_v0  ;;  %v2366_v39 = vadd.f32 1.0, %v3336_v44 }
0x1730   :  { %2512 = vst [vmem:[#allocation7 + $0x20] sm:$0xff] %v2490_v11 }
0x1731   :  { %3337 = vrcp.f32 %v2366_v39 }
0x173b   :  { %v3338_v41 = vpop.eup %3337 }
0x173c   :  { %v2370_v22 = vmul.f32 %v3338_v41, %v3924_v3 }
0x179f   :  { %v2373_v40 = vpop.permute.xlu0 %2372 }
0x17a0   :  { %v2375_v48 = vmul.f32 %v3338_v41, %v2373_v40 }
0x17a2   :  { %2377 = vrot.lane.b32.xlu1 %v2375_v48, %s3422_s22 }
0x1814   :  { %v2378_v19 = vpop.permute.xlu1 %2377 }
0x1815   :  { %v2380_v42 = vadd.f32 %v2378_v19, %v2370_v22 }
0x1817   :  { %3339 = vtanh.f32 %v2380_v42 }
0x1821   :  { %v3340_v52 = vpop.eup %3339 }
0x1822   :  { %2383 = vrot.lane.b32.xlu0 %v3340_v52, %s3421_s7 }
0x1894   :  { %v2384_v13 = vpop.permute.xlu0 %2383 }
0x1895   :  { %v2386_v54 = vmul.f32 %v3338_v41, %v2384_v13 }
0x1897   :  { %2399 = vrot.lane.b32.xlu1 %v2386_v54, %s3422_s22 }
0x1909   :  { %v2400_v43 = vpop.permute.xlu1 %2399 }
0x190a   :  { %3037 = vmatmul.mubr.msk.f32.gmra.mrb[32].mxu0 %vm80_vm0, %v2400_v43 }
0x19dd   :  { %v3038_v46 = vpop.f32.mrb[32].mxu0 }
0x19de   :  { %v2505_v47 = vadd.f32 %v3038_v46, %v2582_v14  ;;  %v2499_v49 = vpop.f32.mrb[33].mxu0 }
0x19df   :  { %v2500_v25 = vadd.f32 %v2582_v14, %v2499_v49 }
0x19e0   :  { %2515 = vst [vmem:[#allocation7 + $0x38] sm:$0xff] %v2505_v47 }
0x19e1   :  { %2514 = vst [vmem:[#allocation7 + $0x30] sm:$0xff] %v2500_v25 }
0x19e2   :  { %3397 = shalt.err (!%p3394_p6)
}
0x19e3   :  { %s3398_s18 = scalar_lea.hbm %s3980_s9, 1024 }
0x19e4   :  { %p3399_p7 = scmp.ne.s32.totalorder %s3980_s9, %s3398_s18  ;;  %p3402_p8 = scmp.lt.u32.totalorder %s3398_s18, %s3980_s9 }
0x19e6   :  { %p3404_p9 = pnand %p3402_p8, %p3399_p7 }
0x19e8   :  { %3407 = shalt.err (!%p3404_p9)
}
0x19e9   :  { %2527 = dma.vmem_to_hbm [thread:$0]  %s2522_s14, 1024, %s3980_s9, [#allocation4], %s3415_s19, %s3415_s19, %s3416_s20  }
0x19ea   :  { %3412 = dma.done.wait [#allocation4], 1024  }
0x19eb   :  { %3413 = vsyncadd [#allocation4], 4294966272 }
0x19ec   :  { %2531 = vsyncpa [#allocation3], 1 }
0x19ed   :  { %2532 = vsyncpa [#allocation6], 1 }
0x19ee   :  { %2533 = vsyncpa [#allocation4], 1 }

</bundles_post_ra>
